<compile_context>
chip_gen: v5e
topology: v5e:2x2
jax: 0.10.0
libtpu: 0.0.40
codegen_flags: <defaults>
</compile_context>

<pallas_src>
import functools

import jax
import jax.numpy as jnp
from jax.experimental import pallas as pl
from jax.experimental.pallas import tpu as pltpu


# ------------------------------------------------------------------ kernels --

def _fused_proj_kernel(x_ref, mean_ref, istd_ref, w_ref, o_ref):
    """Tiled projection with activation-side normalization fold.

    o = ((x - mean) * (1/std)) @ W, grid = (N_tiles [parallel],
    K_tiles [arbitrary, reduction]).  o_ref (f32) is the accumulator: its
    block index is constant across the K axis, so it stays resident in VMEM.
    """
    k = pl.program_id(1)

    @pl.when(k == 0)
    def _():
        o_ref[...] = jnp.zeros_like(o_ref)

    # normalize the tiny activation block (f32), cast to bf16 for the MXU
    xn = ((x_ref[...] - mean_ref[...]) * istd_ref[...]).astype(jnp.bfloat16)
    o_ref[...] += jnp.dot(xn, w_ref[...], preferred_element_type=jnp.float32)


def _infonce_tile_kernel(q_ref, p_ref, n_ref, o_ref, *, inv_temperature,
                         neg_per_group, eps):
    """Unpaired InfoNCE for one tile of groups (one positive, K negatives).

    q, p: (Gt, D); n: (Gt*K, D) with group g's negatives at rows
    [g*K, (g+1)*K).  Output: (Gt, 128) per-group loss broadcast across lanes
    (lane-dense, unmasked store).
    """
    q = q_ref[...]
    p = p_ref[...]
    n = n_ref[...]

    def l2norm(x):
        ss = jnp.maximum(jnp.sum(x * x, axis=-1, keepdims=True), eps)
        return x * jax.lax.rsqrt(ss)           # single EUP rsqrt + VPU mul

    qn, pn, nn = l2norm(q), l2norm(p), l2norm(n)

    # positive logit: (Gt, 1), kept in f32 on the VPU
    pos = jnp.sum(qn * pn, axis=-1, keepdims=True) * inv_temperature

    # all-pairs negative logits on the MXU (bf16 inputs, f32 accumulation):
    # (Gt, D) . (Gt*K, D)^T -> (Gt, Gt*K)
    all_neg = jax.lax.dot_general(
        qn.astype(jnp.bfloat16), nn.astype(jnp.bfloat16),
        (((1,), (1,)), ((), ())),
        preferred_element_type=jnp.float32) * inv_temperature

    gt = q.shape[0]
    gtk = n.shape[0]
    row_g = jax.lax.broadcasted_iota(jnp.int32, (gt, gtk), 0)
    col_g = jax.lax.broadcasted_iota(jnp.int32, (gt, gtk), 1) // neg_per_group
    own = row_g == col_g                       # each group's own K negatives

    neg = jnp.where(own, all_neg, -1e30)
    # cross-entropy with label 0 == logsumexp([pos, neg_own]) - pos, with the
    # positive folded directly into the logsumexp (no sub-128-lane concat).
    m = jnp.maximum(pos, jnp.max(neg, axis=-1, keepdims=True))
    sum_exp = jnp.exp(pos - m) + jnp.sum(
        jnp.where(own, jnp.exp(neg - m), 0.0), axis=-1, keepdims=True)
    per_group = m + jnp.log(sum_exp) - pos     # (Gt, 1)

    o_ref[...] = jnp.broadcast_to(per_group, o_ref.shape)


# ----------------------------------------------------------------- wrappers --

def _round_up(x, m):
    return ((x + m - 1) // m) * m


def _pick_tile(dim, cap, mult=128):
    """Largest multiple of `mult` <= cap that divides `dim` (dim % mult == 0)."""
    assert dim % mult == 0, f"dim {dim} must be a multiple of {mult}"
    t = min((cap // mult) * mult, dim)
    t = max(t, mult)
    while dim % t != 0:
        t -= mult
    return t


def prepare_projection_weight(w_p8, w_p9):
    """One-time parameter prep (analogous to a cached module buffer):
    concatenate the p8/p9 projection weights along N and store in bf16."""
    return jnp.concatenate([w_p8, w_p9], axis=1).astype(jnp.bfloat16)


def backbone_projection(images, pixel_mean, pixel_std, w_proj_bf16, feat_dim):
    """Fused normalize + p8/p9 projection.

    The (x - mean) / std normalization is applied to the tiny activation block
    inside the kernel (mean / 1/std passed as (1, tk)-blocked rows), so the
    K x N weight is streamed from HBM exactly once in bf16 by a single tiled
    MXU matmul producing both feature maps (N = 2 * feat_dim).
    """
    B, C, H, W = images.shape
    K = C * H * W
    N = w_proj_bf16.shape[1]
    assert N == 2 * feat_dim

    # TODO(synk): for image sizes where C*H*W is not a multiple of 128, pad K
    # at parameter-setup time (weight rows + activation columns with zeros).
    x = images.reshape(B, K)                                    # f32
    M_pad = _round_up(B, 8)
    if M_pad != B:
        x = jnp.pad(x, ((0, M_pad - B), (0, 0)))

    mean_row = jnp.repeat(pixel_mean, H * W).reshape(1, K)      # (1, K) f32
    istd_row = jnp.repeat(1.0 / pixel_std, H * W).reshape(1, K)

    # K tile: capped at 512 so the double-buffered bf16 weight block stays
    # small even for realistic K.  N tile: <= N//2 so the "parallel" axis has
    # >= 2 blocks (keeps both v7x TensorCores busy; on single-TC v5e/v6e the
    # extra N step only re-reads the tiny x block).
    tk = _pick_tile(K, 512)
    tn = _pick_tile(N, min(max(N // 2, 128), 2048))
    grid = (N // tn, K // tk)

    out = pl.pallas_call(
        _fused_proj_kernel,
        out_shape=jax.ShapeDtypeStruct((M_pad, N), jnp.float32),
        grid=grid,
        in_specs=[
            pl.BlockSpec((M_pad, tk), lambda j, k: (0, k)),
            pl.BlockSpec((1, tk), lambda j, k: (0, k)),
            pl.BlockSpec((1, tk), lambda j, k: (0, k)),
            pl.BlockSpec((tk, tn), lambda j, k: (k, j)),
        ],
        out_specs=pl.BlockSpec((M_pad, tn), lambda j, k: (0, j)),
        compiler_params=pltpu.CompilerParams(
            dimension_semantics=("parallel", "arbitrary")),
    )(x, mean_row, istd_row, w_proj_bf16)

    out = out[:B]
    return out[:, :feat_dim], out[:, feat_dim:]      # p8 (local), p9 (global)


def batched_infonce(queries, positives, negatives_flat, neg_per_group,
                    temperature=0.1):
    """All contrastive groups in one pallas_call, tiled over the group axis.

    queries/positives: (G, D); negatives_flat: (G*K, D) (group-contiguous).
    Returns (G,) per-group losses.
    """
    G, D = queries.shape
    K = neg_per_group
    G_TILE = 8                                   # sublane-aligned group tile
    G_pad = _round_up(G, G_TILE)
    if G_pad != G:
        padq = jnp.ones((G_pad - G, D), queries.dtype)
        queries = jnp.concatenate([queries, padq], axis=0)
        positives = jnp.concatenate([positives, padq], axis=0)
        padn = jnp.ones(((G_pad - G) * K, D), negatives_flat.dtype)
        negatives_flat = jnp.concatenate([negatives_flat, padn], axis=0)

    kern = functools.partial(_infonce_tile_kernel,
                             inv_temperature=1.0 / temperature,
                             neg_per_group=K, eps=1e-24)
    out = pl.pallas_call(
        kern,
        out_shape=jax.ShapeDtypeStruct((G_pad, 128), jnp.float32),
        grid=(G_pad // G_TILE,),
        in_specs=[
            pl.BlockSpec((G_TILE, D), lambda i: (i, 0)),
            pl.BlockSpec((G_TILE, D), lambda i: (i, 0)),
            pl.BlockSpec((G_TILE * K, D), lambda i: (i, 0)),
        ],
        out_specs=pl.BlockSpec((G_TILE, 128), lambda i: (i, 0)),
        compiler_params=pltpu.CompilerParams(
            dimension_semantics=("parallel",)),
    )(queries, positives, negatives_flat)
    return out[:G, 0]


# ------------------------------------------------------------ forward (glue) --

def generalized_rcnn_forward(batched_images, pixel_mean, pixel_std,
                             w_proj_bf16, feat_dim, *, num_neg_features,
                             img_per_dataset, start_contrastive, iter_num):
    """Training-mode forward. `batched_images` is the (already
    `separte_samples`-flattened) batch of shape (B, C, H, W)."""
    # TODO(synk): ImageList.from_tensors size_divisibility padding is a no-op
    # here (all images share (H, W)); the (x-mean)/std normalization is
    # applied to the activation inside backbone_projection()'s kernel.
    local_query_f, global_query_f = backbone_projection(
        batched_images, pixel_mean, pixel_std, w_proj_bf16, feat_dim)

    # TODO(synk): proposal_generator / roi_heads losses are abstract
    # detectron2 sub-modules; represented as zeros here.
    proposal_losses = {}
    detector_losses = {}
    ins_loss = 0.1 * jnp.float32(0.0)

    losses = {}
    if iter_num >= start_contrastive:
        B = local_query_f.shape[0]
        partition = B // 2
        n_groups = partition // 2
        K = img_per_dataset - 1
        assert K >= 1 and n_groups <= img_per_dataset

        # negative feature banks (no_grad in torch; irrelevant for fwd values)
        s_local, tp_local = local_query_f[0:partition:2], local_query_f[1:partition:2]
        t_local, sp_local = (local_query_f[partition:B:2],
                             local_query_f[partition + 1:B:2])
        s_global, tp_global = global_query_f[0:partition:2], global_query_f[1:partition:2]
        t_global, sp_global = (global_query_f[partition:B:2],
                               global_query_f[partition + 1:B:2])
        assert s_local.shape == (num_neg_features, feat_dim)

        # static negative indices: group cnt excludes its own index
        neg_idx = jnp.asarray(
            [[x for x in range(img_per_dataset) if x != cnt]
             for cnt in range(n_groups)], dtype=jnp.int32).reshape(-1)

        def gather_negs(bank):                   # single static-index gather
            return jnp.take(bank, neg_idx, axis=0)       # (n_groups*K, D)

        # Batched ordering: [local S->TP, local T->SP, global S->TP, global T->SP]
        queries = jnp.concatenate([s_local, t_local, s_global, t_global], 0)
        positives = jnp.concatenate([tp_local, sp_local, tp_global, sp_global], 0)
        negatives = jnp.concatenate(
            [gather_negs(tp_local), gather_negs(sp_local),
             gather_negs(tp_global), gather_negs(sp_global)], 0)

        per_group = batched_infonce(queries, positives, negatives, K)
        # (the reference's trailing "+loss(...)" statements are discarded no-ops)
        local_sum = jnp.sum(per_group[:2 * n_groups])
        global_sum = jnp.sum(per_group[2 * n_groups:])
        losses['local_contrastive_loss'] = 0.01 * local_sum
        losses['global_contrastive_loss'] = 0.1 * global_sum

    losses.update(detector_losses)
    losses.update(proposal_losses)
    losses['instance_contrastive_loss'] = ins_loss
    return losses


# --------------------------------------------------------------------- main --

if __name__ == "__main__":
    key = jax.random.PRNGKey(0)
    k_img, k_w8, k_w9 = jax.random.split(key, 3)

    # Small, self-consistent configuration:
    #   partition/2 == num_neg_features == img_per_dataset
    NUM_NEG_FEATURES = 2
    IMG_PER_DATASET = 2
    START_CONTRASTIVE = 0
    ITER_NUM = 10

    C, H, W = 3, 16, 16
    n_input_dicts = 2 * NUM_NEG_FEATURES          # len(batched_inputs) = 4
    B = 2 * n_input_dicts                          # after separte_samples = 8

    images = jax.random.uniform(k_img, (B, C, H, W), jnp.float32, 0.0, 255.0)

    pixel_mean = jnp.array([103.530, 116.280, 123.675], dtype=jnp.float32)
    pixel_std = jnp.array([57.375, 57.120, 58.395], dtype=jnp.float32)

    FEAT = 1024
    w_p8 = 0.02 * jax.random.normal(k_w8, (C * H * W, FEAT), jnp.float32)
    w_p9 = 0.02 * jax.random.normal(k_w9, (C * H * W, FEAT), jnp.float32)

    # One-time parameter prep: cached bf16, pre-concatenated projection weight
    # (no per-call weight concat / cast / fold).
    w_proj_bf16 = prepare_projection_weight(w_p8, w_p9)

    losses = generalized_rcnn_forward(
        images, pixel_mean, pixel_std, w_proj_bf16, FEAT,
        num_neg_features=NUM_NEG_FEATURES,
        img_per_dataset=IMG_PER_DATASET,
        start_contrastive=START_CONTRASTIVE,
        iter_num=ITER_NUM,
    )
    jax.block_until_ready(losses)
    print("KERNEL_OK")
</pallas_src>

<mosaic_0001>
module attributes {stable_mosaic.version = 11 : i64} {
  func.func @_fused_proj_kernel(%arg0: i32, %arg1: i32, %arg2: memref<8x384xf32, #tpu.memory_space<vmem>>, %arg3: memref<1x384xf32, #tpu.memory_space<vmem>>, %arg4: memref<1x384xf32, #tpu.memory_space<vmem>>, %arg5: memref<384x1024xbf16, #tpu.memory_space<vmem>>, %arg6: memref<8x1024xf32, #tpu.memory_space<vmem>>) attributes {dimension_semantics = [#tpu.dimension_semantics<parallel>, #tpu.dimension_semantics<arbitrary>], iteration_bounds = array<i64: 2, 2>, scalar_prefetch = 0 : i64, scratch_operands = 0 : i64, tpu.core_type = #tpu.core_type<tc>, window_params = [{transform_indices = @transform_0, window_bounds = array<i64: 8, 384>}, {transform_indices = @transform_1, window_bounds = array<i64: 1, 384>}, {transform_indices = @transform_2, window_bounds = array<i64: 1, 384>}, {transform_indices = @transform_3, window_bounds = array<i64: 384, 1024>}, {transform_indices = @transform_4, window_bounds = array<i64: 8, 1024>}]} {
    %c0_i32 = arith.constant 0 : i32
    %0 = arith.cmpi eq, %arg1, %c0_i32 : i32
    %1 = arith.extui %0 : i1 to i32
    %c0_i32_0 = arith.constant 0 : i32
    %2 = arith.cmpi ne, %1, %c0_i32_0 : i32
    scf.if %2 {
      %cst_12 = arith.constant 0.000000e+00 : f32
      %16 = vector.broadcast %cst_12 : f32 to vector<8x1024xf32>
      %c0_13 = arith.constant 0 : index
      %c0_14 = arith.constant 0 : index
      %17 = vector.load %arg6[%c0_13, %c0_14] : memref<8x1024xf32, #tpu.memory_space<vmem>>, vector<8x1024xf32>
      tpu.vector_store %arg6[%c0_13, %c0_14], %16 {strides = array<i32>} : memref<8x1024xf32, #tpu.memory_space<vmem>>, vector<8x1024xf32>,
    } else {
    }
    %c0 = arith.constant 0 : index
    %c0_1 = arith.constant 0 : index
    %3 = vector.load %arg2[%c0, %c0_1] : memref<8x384xf32, #tpu.memory_space<vmem>>, vector<8x384xf32>
    %c0_2 = arith.constant 0 : index
    %c0_3 = arith.constant 0 : index
    %4 = vector.load %arg3[%c0_2, %c0_3] : memref<1x384xf32, #tpu.memory_space<vmem>>, vector<1x384xf32>
    %5 = vector.broadcast %4 : vector<1x384xf32> to vector<8x384xf32>
    %6 = arith.subf %3, %5 : vector<8x384xf32>
    %c0_4 = arith.constant 0 : index
    %c0_5 = arith.constant 0 : index
    %7 = vector.load %arg4[%c0_4, %c0_5] : memref<1x384xf32, #tpu.memory_space<vmem>>, vector<1x384xf32>
    %8 = vector.broadcast %7 : vector<1x384xf32> to vector<8x384xf32>
    %9 = arith.mulf %6, %8 : vector<8x384xf32>
    %10 = arith.truncf %9 : vector<8x384xf32> to vector<8x384xbf16>
    %c0_6 = arith.constant 0 : index
    %c0_7 = arith.constant 0 : index
    %11 = vector.load %arg6[%c0_6, %c0_7] : memref<8x1024xf32, #tpu.memory_space<vmem>>, vector<8x1024xf32>
    %c0_8 = arith.constant 0 : index
    %c0_9 = arith.constant 0 : index
    %12 = vector.load %arg5[%c0_8, %c0_9] : memref<384x1024xbf16, #tpu.memory_space<vmem>>, vector<384x1024xbf16>
    %cst = arith.constant dense<0.000000e+00> : vector<8x1024xf32>
    %13 = tpu.matmul %10, %12, %cst {dimension_numbers = #tpu.dot_dimension_numbers<[1], [0], [0], [1], [0, 0, 1, 1], [], []>} : vector<8x384xbf16>, vector<384x1024xbf16>, vector<8x1024xf32> -> vector<8x1024xf32>
    %14 = arith.addf %11, %13 : vector<8x1024xf32>
    %c0_10 = arith.constant 0 : index
    %c0_11 = arith.constant 0 : index
    %15 = vector.load %arg6[%c0_10, %c0_11] : memref<8x1024xf32, #tpu.memory_space<vmem>>, vector<8x1024xf32>
    tpu.vector_store %arg6[%c0_10, %c0_11], %14 {strides = array<i32>} : memref<8x1024xf32, #tpu.memory_space<vmem>>, vector<8x1024xf32>,
    return
  }
  func.func @transform_0(%arg0: i32, %arg1: i32) -> (i32, i32) {
    %c0_i32 = arith.constant 0 : i32
    %c0_i32_0 = arith.constant 0 : i32
    return %c0_i32, %arg1 : i32, i32
  }
  func.func @transform_1(%arg0: i32, %arg1: i32) -> (i32, i32) {
    %c0_i32 = arith.constant 0 : i32
    %c0_i32_0 = arith.constant 0 : i32
    return %c0_i32, %arg1 : i32, i32
  }
  func.func @transform_2(%arg0: i32, %arg1: i32) -> (i32, i32) {
    %c0_i32 = arith.constant 0 : i32
    %c0_i32_0 = arith.constant 0 : i32
    return %c0_i32, %arg1 : i32, i32
  }
  func.func @transform_3(%arg0: i32, %arg1: i32) -> (i32, i32) {
    %c0_i32 = arith.constant 0 : i32
    return %arg1, %arg0 : i32, i32
  }
  func.func @transform_4(%arg0: i32, %arg1: i32) -> (i32, i32) {
    %c0_i32 = arith.constant 0 : i32
    %c0_i32_0 = arith.constant 0 : i32
    return %c0_i32, %arg0 : i32, i32
  }
}

</mosaic_0001>

<bundles_post_ra>
// kernel: tpu_custom_call.1
= control target key start
LH: loop header
LB: loop body
LE: loop exit
PB: predicated region body
PF: predicated region fallthrough
CT: control target
= control target key end

     0   :  { %s4230_s0 = inlined_call_operand.hbm [shape: f32[8,768], index: 0, kind: input, shape index: {}]   ;;  %s4231_s1 = inlined_call_operand.hbm [shape: f32[1,768], index: 1, kind: input, shape index: {}]   ;;  %s4232_s2 = inlined_call_operand.hbm [shape: f32[1,768], index: 2, kind: input, shape index: {}]   ;;  %s4233_s3 = inlined_call_operand.hbm [shape: bf16[768,2048], index: 3, kind: input, shape index: {}]   ;;  %s4234_s4 = inlined_call_operand.hbm [shape: f32[8,2048], index: 4, kind: output, shape index: {}]  }
   0x1   :  { %4251 = sst [smem:[#allocation28_spill]] %s4231_s1 }
   0x2   :  { %4252 = sst [smem:[#allocation29_spill]] %s4234_s4 }
   0x3   :  { %9 = vsyncpa [#allocation3], 0 }
   0x4   :  { %11 = vsyncpa [#allocation3 + $0x1], 0 }
   0x5   :  { %12 = vsyncpa [#allocation6], 0 }
   0x6   :  { %14 = vsyncpa [#allocation6 + $0x1], 0 }
   0x7   :  { %15 = vsyncpa [#allocation9], 0 }
   0x8   :  { %17 = vsyncpa [#allocation9 + $0x1], 0 }
   0x9   :  { %18 = vsyncpa [#allocation4], 0 }
   0xa   :  { %20 = vsyncpa [#allocation4 + $0x1], 0  ;;  %s3487_s15 = smov 0   ;;  %s3489_s16 = smov 0  }
   0xb   :  { %s3491_s17 = smov 0   ;;  %s3493_s18 = smov 0  }
   0xc   :  { %s3495_s19 = smov 0   ;;  %s3497_s20 = smov 0  }
   0xd   :  { %s3499_s21 = smov 0   ;;  %s3501_s22 = smov 0  }
   0xe   :  { %s3503_s23 = smov 0   ;;  %s3505_s24 = smov 0  }
   0xf   :  { %s3507_s25 = smov 0   ;;  %s3509_s26 = smov 0  }
  0x10   :  { %s3511_s27 = smov 0   ;;  %s3513_s28 = smov 0  }
  0x11 LB: > { %4253 = sst [smem:[#allocation15_spill]] %s3404_s15  ;;  %s3556_s29 = sadd.s32 4294967295, %s3456_s28   ;;  %s3456_s28 = sphi %s3513_s28, %s26_s28   ;;  %s3452_s27 = sphi %s3511_s27, %s4309_s27   ;;  %s3448_s26 = sphi %s3509_s26, %s4308_s26   ;;  %s3444_s25 = sphi %s3507_s25, %s4307_s25   ;;  %s3440_s24 = sphi %s3505_s24, %s4306_s24   ;;  %s3436_s23 = sphi %s3503_s23, %s4297_s23   ;;  %s3432_s22 = sphi %s3501_s22, %s4305_s22   ;;  %s3428_s21 = sphi %s3499_s21, %s4304_s21   ;;  %s3424_s20 = sphi %s3497_s20, %s4303_s20   ;;  %s3420_s19 = sphi %s3495_s19, %s4302_s19   ;;  %s3416_s18 = sphi %s3493_s18, %s4295_s18   ;;  %s3412_s17 = sphi %s3491_s17, %s4301_s17   ;;  %s3408_s16 = sphi %s3489_s16, %s4300_s16   ;;  %s3404_s15 = sphi %s3487_s15, %s4294_s15  }
  0x12   : > { %4254 = sst [smem:[#allocation16_spill]] %s3408_s16  ;;  %s2052_s30 = sadd.s32 4294967294, %s3456_s28  }
  0x13   : > { %4255 = sst [smem:[#allocation17_spill]] %s3420_s19  ;;  %s35_s5 = sadd.s32 1, %s3448_s26 }
  0x14   : > { %4256 = sst [smem:[#allocation18_spill]] %s3436_s23  ;;  %s45_s6 = sadd.s32 1, %s3436_s23 }
  0x15   : > { %4257 = sst [smem:[#allocation19_spill]] %s3440_s24  ;;  %p3561_p0 = scmp.ge.s32.totalorder %s35_s5, 2 }
  0x16   : > { %4258 = sst [smem:[#allocation20_spill]] %s3444_s25  ;;  %p52_p1 = scmp.ne.s32.totalorder %s3436_s23, %s3432_s22 }
  0x17   : > { %4259 = sst [smem:[#allocation21_spill]] %s3456_s28  ;;  %p53_p2 = scmp.eq.s32.totalorder %s3456_s28, 0 }
  0x18   : > { %4260 = sst [smem:[#allocation22_spill]] %s3556_s29  ;;  %p58_p3 = scmp.ne.s32.totalorder %s3432_s22, %s3428_s21 }
  0x19   : > { %s4311_s5 = smov (%p3561_p0, %s35_s5), 0  ;;  %p3573_p4 = por %p53_p2, %p52_p1 }
  0x1a   : > { %4262 = sst [smem:[#allocation23_spill]] %s4311_s5  ;;  %p59_p5 = scmp.eq.s32.totalorder %s3556_s29, 0 }
  0x1b   : > { %s3580_s9 = ssub.s32 %s3448_s26, %s4311_s5  ;;  %p132_p8 = scmp.ne.s32.totalorder %s3424_s20, %s3420_s19 }
  0x1c   : > { %p43_p6 = scmp.eq.s32.totalorder %s3580_s9, 0  ;;  %p3584_p7 = por %p59_p5, %p58_p3 }
  0x1d   : > { %p138_p9 = scmp.ne.s32.totalorder %s3420_s19, %s3416_s18  ;;  %p3595_p10 = por %p132_p8, %p53_p2 }
  0x1e   : > { %s4264_s11 = scalar_select %p3584_p7, 1, 0 }
  0x1f   : > { %s3593_s12 = scalar_select %p43_p6, %s3436_s23, %s45_s6  }
  0x20   : > { %p3599_p11 = por %p138_p9, %p59_p5  ;;  %p161_p12 = scmp.ne.s32.totalorder %s3412_s17, %s3408_s16 }
  0x21   : > { %4265 = sst [smem:[#allocation24_spill]] %s3593_s12  ;;  %p162_p13 = scmp.eq.s32.totalorder %s3556_s29, 3 }
  0x22   : > { %s4267_s14 = scalar_select %p3599_p11, 1, 0 }
  0x23   : > { %p167_p1 = scmp.ne.s32.totalorder %s3408_s16, %s3404_s15  ;;  %p168_p3 = scmp.eq.s32.totalorder %s2052_s30, 3 }
  0x24   : > { %4268 = sst [smem:[#allocation25_spill]] %s4267_s14  ;;  %p3609_p7 = por %p162_p13, %p161_p12 }
  0x25   : > { %p3064_p6 = scmp.lt.s32.totalorder %s3456_s28, 4  ;;  %p3614_p2 = por %p168_p3, %p167_p1 }
  0x26   : > { %s4269_s10 = scalar_select %p3609_p7, 1, 0 }
  0x27   : > { %s4271_s18 = scalar_select %p3614_p2, 1, 0 }
  0x28   : > { %4270 = sst [smem:[#allocation26_spill]] %s4269_s10  ;;  %s3619_s6 = sand.u32 1, %s3436_s23  }
  0x29   : > { %4272 = sst [smem:[#allocation27_spill]] %s4271_s18  ;;  %p3623_p5 = pnand %p3064_p6, %p3573_p4 }
  0x2a   : > { %s208_s30 = sand.u32 1, %s3456_s28   ;;  %s3031_s5 = smul.u32 3, %s3619_s6 }
  0x2b   : > { %s213_s12 = smul.u32 3, %s3448_s26  ;;  %p3632_p8 = pnand %p3064_p6, %p3595_p10 }
  0x2c   : > { %s4275_s1 = sld [smem:[#allocation28_spill]]  ;;  %s212_s10 = scalar_lea.vmem [#allocation5], %s3031_s5 }
  0x2d   : > { %s220_s4 = sshll.u32 %s212_s10, 4  ;;  %s209_s24 = scalar_lea.sflag [#allocation6], %s208_s30  ;;  %s221_s4 = int_to_ptr.vmem [resolvable:$true] %s220_s4 }
  0x2e   : > { %p2059_p4 = scmp.ge.s32.totalorder %s3456_s28, 1  ;;  %p269_p9 = scmp.lt.s32.totalorder %s3456_s28, 5 }
  0x2f   : > { %s3030_s16 = smul.u32 24, %s3619_s6  ;;  %s235_s10 = scalar_lea.hbm %s4232_s2, %s213_s12 }
  0x30   : > { %p3643_p10 = pnand %p2059_p4, %p269_p9  ;;  %s2835_s23 = smul.u32 24, %s3448_s26 }
  0x31   : > { %s237_s30 = sshll.u32 %s235_s10, 4  ;;  %s189_s29 = scalar_lea.sflag [#allocation3], %s3619_s6  ;;  %s238_s30 = int_to_ptr.hbm [resolvable:$true] %s237_s30 }
  0x32   : > { %s216_s8 = scalar_lea.hbm %s4275_s1, %s213_s12  ;;  %s231_s1 = scalar_lea.vmem [#allocation7], %s3031_s5 }
  0x33   : > { %s218_s25 = sshll.u32 %s216_s8, 4  ;;  %s239_s12 = sshll.u32 %s231_s1, 4  ;;  %s219_s25 = int_to_ptr.hbm [resolvable:$true] %s218_s25  ;;  %s240_s12 = int_to_ptr.vmem [resolvable:$true] %s239_s12 }
  0x34   : > { %3053 = dma.hbm_to_vmem [thread:$0]  (!%p3623_p5), %s219_s25, 48, %s221_s4, %s209_s24  }
  0x35   : > { %s197_s4 = scalar_lea.hbm %s4230_s0, %s2835_s23  ;;  %s192_s25 = scalar_lea.vmem [#allocation2], %s3030_s16 }
  0x36   : > { %s201_s28 = sshll.u32 %s192_s25, 4  ;;  %s199_s19 = sshll.u32 %s197_s4, 4  ;;  %s202_s28 = int_to_ptr.vmem [resolvable:$true] %s201_s28  ;;  %s200_s19 = int_to_ptr.hbm [resolvable:$true] %s199_s19 }
  0x37   : > { %3050 = dma.hbm_to_vmem [thread:$0]  (!%p3623_p5), %s200_s19, 384, %s202_s28, %s189_s29  }
  0x38   : > { %3056 = dma.hbm_to_vmem [thread:$0]  (!%p3623_p5), %s238_s30, 48, %s240_s12, %s209_s24  }
  0x39   : > { %s38_s14 = sadd.s32 1, %s3452_s27  ;;  %s246_s23 = sand.u32 1, %s3424_s20  }
  0x3a   : > { %s4313_s14 = smov (!%p3561_p0, %s38_s14), %s3452_s27  ;;  %s3033_s16 = smul.u32 1536, %s246_s23 }
  0x3b   : > { %p40_p12 = scmp.ge.s32.totalorder %s4313_s14, 2  ;;  %s2056_s6 = sshll.u32 %s3452_s27, 3 }
  0x3c   : > { %s2836_s18 = smul.u32 768, %s3448_s26  ;;  %s250_s28 = scalar_lea.vmem [#allocation8], %s3033_s16 }
  0x3d   : > { %s4315_s14 = smov (%p40_p12, %s4313_s14), 0  ;;  %s261_s29 = sshll.u32 %s250_s28, 4  ;;  %s262_s29 = int_to_ptr.vmem [resolvable:$true] %s261_s29 }
  0x3e   : > { %s256_s19 = sadd.s32 %s2836_s18, %s2056_s6  ;;  %s121_s24 = ssub.s32 %s3452_s27, %s4315_s14 }
  0x3f   : > { %s2058_s5 = sshll.u32 %s256_s19, 2  ;;  %s122_s21 = sor.u32 %s121_s24, %s3580_s9 }
  0x40   : > { %p149_p13 = scmp.eq.s32.totalorder %s121_s24, 0  ;;  %p123_p1 = scmp.eq.s32.totalorder %s122_s21, 0 }
  0x41   : > { %s258_s30 = scalar_lea.hbm %s4233_s3, %s2058_s5  ;;  %s4277_s8 = sadd.s32 1, %s3412_s17 }
  0x42   : > { %s3678_s4 = scalar_select %p149_p13, %s3412_s17, %s4277_s8  }
  0x43   : > { %s4278_s25 = sadd.s32 1, %s3424_s20  ;;  %s259_s12 = sshll.u32 %s258_s30, 4  ;;  %s260_s12 = int_to_ptr.hbm [resolvable:$true] %s259_s12 }
  0x44   : > { %s3683_s1 = scalar_select %p123_p1, %s3424_s20, %s4278_s25  }
  0x45   : > { %s247_s16 = scalar_lea.sflag [#allocation9], %s246_s23  ;;  %s3458_s6 = smov 1024  }
  0x46   : > { %s3459_s18 = smov 512   ;;  %s3460_s19 = smov 32  }
  0x47   : > { %3059 = dma.hbm_to_vmem [thread:$0]  (!%p3632_p8), %s260_s12, 24576, %s262_s29, %s247_s16, %s3458_s6, %s3459_s18, %s3460_s19  }
  0x48   : > { %273 = sbr.rel (%p3643_p10) target bundleno = 476 (0x1dc), region = 36  ;;  %s275_s9 = sand.u32 (!%p3643_p10), 1, %s3432_s22  }
  0x49   : > { %s3034_s28 = smul.u32 (!%p3643_p10), 24, %s275_s9  ;;  %s276_s24 = scalar_lea.sflag (!%p3643_p10), [#allocation3], %s275_s9 }
  0x4a   : > { %p4279_p0 = scmp.ne.s32.totalorder (!%p3643_p10), %s4264_s11, 0 }
  0x4b   : > { %s3690_s5 = scalar_lea.vmem (!%p3643_p10), [#allocation2], %s3034_s28 }
  0x4d   : > { %3387 = dma.done.wait (%p4279_p0), %s276_s24, 384  }
  0x4e   : > { %3389 = vsyncadd (%p4279_p0), %s276_s24, 4294966912  ;;  %s4280_s23 = sld [smem:[#allocation22_spill]]  ;;  %s3035_s15 = smul.u32 3, %s275_s9 }
  0x50   : > { %s3697_s7 = scalar_lea.vmem [#allocation5], %s3035_s15 }
  0x54   : > { %s285_s21 = sand.u32 1, %s4280_s23  }
  0x55   : > { %s286_s29 = scalar_lea.sflag [#allocation6], %s285_s21 }
  0x56   : > { %3391 = dma.done.wait (%p4279_p0), %s286_s29, 96  }
  0x57   : > { %3393 = vsyncadd (%p4279_p0), %s286_s29, 4294967200  ;;  %s4281_s13 = sld [smem:[#allocation17_spill]]  ;;  %s3704_s25 = scalar_lea.vmem [#allocation7], %s3035_s15 }
  0x5d   : > { %s305_s30 = sand.u32 1, %s4281_s13  }
  0x5e   : > { %s3036_s8 = smul.u32 1536, %s305_s30  ;;  %s306_s12 = scalar_lea.sflag [#allocation9], %s305_s30 }
  0x60   : > { %s3706_s16 = scalar_lea.vmem [#allocation8], %s3036_s8 }
  0x61   : > { %3395 = dma.done.wait (%p3599_p11), %s306_s12, 24576  }
  0x62   : > { %3397 = vsyncadd (%p3599_p11), %s306_s12, 4294942720  ;;  %s4283_s6 = sld [smem:[#allocation16_spill]] }
  0x63   : > { %s4284_s9 = sld [smem:[#allocation19_spill]] }
  0x68   : > { %s347_s18 = sand.u32 1, %s4283_s6  }
  0x69   : > { %s2060_s11 = sshll.u32 %s347_s18, 6  ;;  %p2061_p3 = scmp.ne.s32.totalorder %s4284_s9, 0 }
  0x6a   : > { %s3715_s19 = scalar_lea.vmem [#allocation10], %s2060_s11 }
  0x6b   : > { %359 = sbr.rel (%p2061_p3) target bundleno = 121 (0x79), region = 56 }
  0x70   : > { %v3461_v0 = vmov 0.0  }
  0x71   : > { %360 = vst [vmem:[%s3715_s19] sm:$0xff] %v3461_v0 }
  0x72   : > { %361 = vst [vmem:[%s3715_s19 + $0x8] sm:$0xff] %v3461_v0 }
  0x73   : > { %362 = vst [vmem:[%s3715_s19 + $0x10] sm:$0xff] %v3461_v0 }
  0x74   : > { %363 = vst [vmem:[%s3715_s19 + $0x18] sm:$0xff] %v3461_v0 }
  0x75   : > { %364 = vst [vmem:[%s3715_s19 + $0x20] sm:$0xff] %v3461_v0 }
  0x76   : > { %365 = vst [vmem:[%s3715_s19 + $0x28] sm:$0xff] %v3461_v0 }
  0x77   : > { %366 = vst [vmem:[%s3715_s19 + $0x30] sm:$0xff] %v3461_v0 }
  0x78   : > { %367 = vst [vmem:[%s3715_s19 + $0x38] sm:$0xff] %v3461_v0 }
  0x79 PF: > { %v2288_v1 = vld [vmem:[%s3706_s16 + $0x1c0] sm:$0xf]  ;;  %v2893_v10 = vld [vmem:[%s3706_s16 + $0x1c4] sm:$0xf]  ;;  %s4285_s28 = sld [smem:[#allocation20_spill]]  ;;  %s1898_s10 = sshll.u32 %s3715_s19, 4  ;;  %s1899_s10 = int_to_ptr.vmem [resolvable:$true] %s1898_s10 }
  0x7a   : > { %v2897_v2 = vld [vmem:[%s3706_s16 + $0x1dc] sm:$0xf0]  ;;  %v2290_v11 = vld [vmem:[%s3706_s16 + $0x1e0] sm:$0xf0]  ;;  %s4286_s21 = sld [smem:[#allocation29_spill]]  ;;  %s1885_s8 = scalar_lea.sflag [#allocation4], %s347_s18 }
  0x7b   : > { %v2544_v3 = vld [vmem:[%s3706_s16 + $0x3c0] sm:$0xf]  ;;  %v2289_v4 = vor.u32 %v2897_v2, %v2288_v1  ;;  %v2293_v13 = vor.u32 %v2893_v10, %v2290_v11  ;;  %v2885_v21 = vld [vmem:[%s3706_s16 + $0x184] sm:$0xf] }
  0x7c   : > { %v2961_v5 = vld [vmem:[%s3706_s16 + $0x3dc] sm:$0xf0]  ;;  %v2258_v23 = vld [vmem:[%s3706_s16 + $0x1a0] sm:$0xf0] }
  0x7d   : > { %v2800_v6 = vld [vmem:[%s3706_s16 + $0x5c0] sm:$0xf]  ;;  %v2545_v8 = vor.u32 %v2961_v5, %v2544_v3  ;;  %1556 = vmatpush.bf16.msra.mxu0 %v2289_v4  ;;  %1595 = vmatpush.bf16.msra.mxu3 %v2293_v13  ;;  %v2261_v26 = vor.u32 %v2885_v21, %v2258_v23  ;;  %v2877_v32 = vld [vmem:[%s3706_s16 + $0x144] sm:$0xf] }
  0x7e   : > { %v3025_v7 = vld [vmem:[%s3706_s16 + $0x5dc] sm:$0xf0]  ;;  %v2226_v33 = vld [vmem:[%s3706_s16 + $0x160] sm:$0xf0] }
  0x7f   : > { %v2801_v9 = vor.u32 %v3025_v7, %v2800_v6  ;;  %v2256_v12 = vld [vmem:[%s3706_s16 + $0x180] sm:$0xf]  ;;  %1569 = vmatpush.bf16.msra.mxu1 %v2545_v8  ;;  %v2229_v39 = vor.u32 %v2877_v32, %v2226_v33  ;;  %v2869_v43 = vld [vmem:[%s3706_s16 + $0x104] sm:$0xf]  ;;  %s3029_s24 = sshll.u32 %s4285_s28, 6 }
  0x80   : > { %v2889_v14 = vld [vmem:[%s3706_s16 + $0x19c] sm:$0xf0]  ;;  %v2194_v44 = vld [vmem:[%s3706_s16 + $0x120] sm:$0xf0]  ;;  %s4287_s29 = smov %s4286_s21 }
  0x81   : > { %v2512_v15 = vld [vmem:[%s3706_s16 + $0x380] sm:$0xf]  ;;  %1582 = vmatpush.bf16.msra.mxu2 %v2801_v9  ;;  %v2257_v17 = vor.u32 %v2889_v14, %v2256_v12  ;;  %1596 = vmatpush.bf16.msra.mxu3 %v2261_v26  ;;  %v2197_v51 = vor.u32 %v2869_v43, %v2194_v44  ;;  %v2861_v55 = vld [vmem:[%s3706_s16 + $0xc4] sm:$0xf]  ;;  %s3322_s11 = scalar_lea.hbm %s4287_s29, 128 }
  0x82   : > { %v2953_v16 = vld [vmem:[%s3706_s16 + $0x39c] sm:$0xf0]  ;;  %v2162_v56 = vld [vmem:[%s3706_s16 + $0xe0] sm:$0xf0] }
  0x83   : > { %v2513_v18 = vor.u32 %v2953_v16, %v2512_v15  ;;  %v2768_v19 = vld [vmem:[%s3706_s16 + $0x580] sm:$0xf]  ;;  %1557 = vmatpush.bf16.msra.mxu0 %v2257_v17  ;;  %v2165_v63 = vor.u32 %v2861_v55, %v2162_v56  ;;  %v2853_v3 = vld [vmem:[%s3706_s16 + $0x84] sm:$0xf] }
  0x84   : > { %v3017_v20 = vld [vmem:[%s3706_s16 + $0x59c] sm:$0xf0]  ;;  %v2130_v4 = vld [vmem:[%s3706_s16 + $0xa0] sm:$0xf0] }
  0x85   : > { %v2769_v22 = vor.u32 %v3017_v20, %v2768_v19  ;;  %v2224_v24 = vld [vmem:[%s3706_s16 + $0x140] sm:$0xf]  ;;  %1570 = vmatpush.bf16.msra.mxu1 %v2513_v18  ;;  %1597 = vmatpush.bf16.msra.mxu3 %v2229_v39  ;;  %v2133_v11 = vor.u32 %v2853_v3, %v2130_v4  ;;  %v2845_v15 = vld [vmem:[%s3706_s16 + $0x44] sm:$0xf]  ;;  %v2962_v39 = vld [vmem:[%s3706_s16 + $0x3e4] sm:$0xf0] }
  0x86   : > { %v2881_v25 = vld [vmem:[%s3706_s16 + $0x15c] sm:$0xf0]  ;;  %v2098_v16 = vld [vmem:[%s3706_s16 + $0x60] sm:$0xf0]  ;;  %v2946_v3 = vld [vmem:[%s3706_s16 + $0x364] sm:$0xf0] }
  0x87   : > { %v2480_v27 = vld [vmem:[%s3706_s16 + $0x340] sm:$0xf]  ;;  %v2225_v30 = vor.u32 %v2881_v25, %v2224_v24  ;;  %1583 = vmatpush.bf16.msra.mxu2 %v2769_v22  ;;  %v2101_v25 = vor.u32 %v2845_v15, %v2098_v16  ;;  %v2802_v33 = vld [vmem:[%s3706_s16 + $0x5e0] sm:$0xf0] }
  0x88   : > { %v2945_v28 = vld [vmem:[%s3706_s16 + $0x35c] sm:$0xf0]  ;;  %v2949_v44 = vld [vmem:[%s3706_s16 + $0x384] sm:$0xf] }
  0x89   : > { %v2736_v29 = vld [vmem:[%s3706_s16 + $0x540] sm:$0xf]  ;;  %v2481_v34 = vor.u32 %v2945_v28, %v2480_v27  ;;  %1558 = vmatpush.bf16.msra.mxu0 %v2225_v30  ;;  %1598 = vmatpush.bf16.msra.mxu3 %v2197_v51  ;;  %v2837_v27 = vld [vmem:[%s3706_s16 + $0x4] sm:$0xf]  ;;  %v2520_v51 = vld [vmem:[%s3706_s16 + $0x388] sm:$0xf] }
  0x8a   : > { %v3009_v31 = vld [vmem:[%s3706_s16 + $0x55c] sm:$0xf0]  ;;  %v2066_v28 = vld [vmem:[%s3706_s16 + $0x20] sm:$0xf0] }
  0x8b   : > { %v2737_v35 = vor.u32 %v3009_v31, %v2736_v29  ;;  %v2192_v36 = vld [vmem:[%s3706_s16 + $0x100] sm:$0xf]  ;;  %1571 = vmatpush.bf16.msra.mxu1 %v2481_v34  ;;  %v2957_v29 = vld [vmem:[%s3706_s16 + $0x3c4] sm:$0xf]  ;;  %v2296_v34 = vld [vmem:[%s3706_s16 + $0x1c8] sm:$0xf] }
  0x8c   : > { %v2873_v37 = vld [vmem:[%s3706_s16 + $0x11c] sm:$0xf0]  ;;  %v2546_v30 = vld [vmem:[%s3706_s16 + $0x3e0] sm:$0xf0] }
  0x8d   : > { %v2448_v38 = vld [vmem:[%s3706_s16 + $0x300] sm:$0xf]  ;;  %v2193_v45 = vor.u32 %v2873_v37, %v2192_v36  ;;  %1584 = vmatpush.bf16.msra.mxu2 %v2737_v35  ;;  %1599 = vmatpush.bf16.msra.mxu3 %v2165_v63  ;;  %v3021_v31 = vld [vmem:[%s3706_s16 + $0x5c4] sm:$0xf]  ;;  %v2898_v35 = vld [vmem:[%s3706_s16 + $0x1e4] sm:$0xf0] }
  0x8e   : > { %v2937_v40 = vld [vmem:[%s3706_s16 + $0x31c] sm:$0xf0]  ;;  %v2297_v43 = vor.u32 %v2898_v35, %v2296_v34  ;;  %v2482_v55 = vld [vmem:[%s3706_s16 + $0x360] sm:$0xf0] }
  0x8f   : > { %v2704_v41 = vld [vmem:[%s3706_s16 + $0x500] sm:$0xf]  ;;  %v2449_v46 = vor.u32 %v2937_v40, %v2448_v38  ;;  %1559 = vmatpush.bf16.msra.mxu0 %v2193_v45  ;;  %v2552_v38 = vld [vmem:[%s3706_s16 + $0x3c8] sm:$0xf]  ;;  %v2069_v40 = vor.u32 %v2837_v27, %v2066_v28  ;;  %v2514_v45 = vld [vmem:[%s3706_s16 + $0x3a0] sm:$0xf0] }
  0x90   : > { %v3001_v42 = vld [vmem:[%s3706_s16 + $0x51c] sm:$0xf0]  ;;  %v3005_v56 = vld [vmem:[%s3706_s16 + $0x544] sm:$0xf] }
  0x91   : > { %v2705_v47 = vor.u32 %v3001_v42, %v2704_v41  ;;  %v2160_v48 = vld [vmem:[%s3706_s16 + $0xc0] sm:$0xf]  ;;  %1572 = vmatpush.bf16.msra.mxu1 %v2449_v46  ;;  %1600 = vmatpush.bf16.msra.mxu3 %v2133_v11  ;;  %v2549_v41 = vor.u32 %v2957_v29, %v2546_v30  ;;  %v2805_v42 = vor.u32 %v3021_v31, %v2802_v33  ;;  %v3013_v46 = vld [vmem:[%s3706_s16 + $0x584] sm:$0xf] }
  0x92   : > { %v2865_v49 = vld [vmem:[%s3706_s16 + $0xdc] sm:$0xf0]  ;;  %v369_v15 = vld [vmem:[%s3690_s5 + $0x8] sm:$0xff] }
  0x93   : > { %v2416_v50 = vld [vmem:[%s3706_s16 + $0x2c0] sm:$0xf]  ;;  %v2161_v57 = vor.u32 %v2865_v49, %v2160_v48  ;;  %1585 = vmatpush.bf16.msra.mxu2 %v2705_v47  ;;  %v2553_v47 = vor.u32 %v2962_v39, %v2552_v38  ;;  %v2770_v48 = vld [vmem:[%s3706_s16 + $0x5a0] sm:$0xf0]  ;;  %v2264_v49 = vld [vmem:[%s3706_s16 + $0x188] sm:$0xf] }
  0x94   : > { %v2929_v52 = vld [vmem:[%s3706_s16 + $0x2dc] sm:$0xf0]  ;;  %v2925_v31 = vld [vmem:[%s3706_s16 + $0x2c4] sm:$0xf]  ;;  %v2168_v38 = vld [vmem:[%s3706_s16 + $0xc8] sm:$0xf] }
  0x95   : > { %v2672_v53 = vld [vmem:[%s3706_s16 + $0x4c0] sm:$0xf]  ;;  %v2417_v58 = vor.u32 %v2929_v52, %v2416_v50  ;;  %1560 = vmatpush.bf16.msra.mxu0 %v2161_v57  ;;  %1601 = vmatpush.bf16.msra.mxu3 %v2101_v25  ;;  %v2890_v50 = vld [vmem:[%s3706_s16 + $0x1a4] sm:$0xf0]  ;;  %v2773_v57 = vor.u32 %v3013_v46, %v2770_v48  ;;  %v2989_v33 = vld [vmem:[%s3706_s16 + $0x4c4] sm:$0xf] }
  0x96   : > { %v2993_v54 = vld [vmem:[%s3706_s16 + $0x4dc] sm:$0xf0]  ;;  %v2954_v52 = vld [vmem:[%s3706_s16 + $0x3a4] sm:$0xf0]  ;;  %v2917_v48 = vld [vmem:[%s3706_s16 + $0x284] sm:$0xf] }
  0x97   : > { %v2673_v59 = vor.u32 %v2993_v54, %v2672_v53  ;;  %v2128_v60 = vld [vmem:[%s3706_s16 + $0x80] sm:$0xf]  ;;  %1573 = vmatpush.bf16.msra.mxu1 %v2417_v58  ;;  %v2517_v53 = vor.u32 %v2949_v44, %v2514_v45  ;;  %v2941_v54 = vld [vmem:[%s3706_s16 + $0x344] sm:$0xf]  ;;  %v2265_v58 = vor.u32 %v2890_v50, %v2264_v49  ;;  %v2866_v39 = vld [vmem:[%s3706_s16 + $0xe4] sm:$0xf0] }
  0x98   : > { %v2857_v61 = vld [vmem:[%s3706_s16 + $0x9c] sm:$0xf0]  ;;  %v2386_v49 = vld [vmem:[%s3706_s16 + $0x2a0] sm:$0xf0] }
  0x99   : > { %v2384_v62 = vld [vmem:[%s3706_s16 + $0x280] sm:$0xf]  ;;  %v2129_v5 = vor.u32 %v2857_v61, %v2128_v60  ;;  %1586 = vmatpush.bf16.msra.mxu2 %v2673_v59  ;;  %1602 = vmatpush.bf16.msra.mxu3 %v2069_v40  ;;  %v2738_v59 = vld [vmem:[%s3706_s16 + $0x560] sm:$0xf0]  ;;  %v2232_v60 = vld [vmem:[%s3706_s16 + $0x148] sm:$0xf] }
  0x9a   : > { %v2921_v0 = vld [vmem:[%s3706_s16 + $0x29c] sm:$0xf0]  ;;  %v2882_v61 = vld [vmem:[%s3706_s16 + $0x164] sm:$0xf0]  ;;  %v2981_v50 = vld [vmem:[%s3706_s16 + $0x484] sm:$0xf] }
  0x9b   : > { %v2640_v1 = vld [vmem:[%s3706_s16 + $0x480] sm:$0xf]  ;;  %v2385_v6 = vor.u32 %v2921_v0, %v2384_v62  ;;  %1561 = vmatpush.bf16.msra.mxu0 %v2129_v5  ;;  %v2521_v62 = vor.u32 %v2954_v52, %v2520_v51  ;;  %v371_v0 = vld [vmem:[%s3697_s7] sm:$0x7]  ;;  %v2233_v11 = vor.u32 %v2882_v61, %v2232_v60  ;;  %v2642_v52 = vld [vmem:[%s3706_s16 + $0x4a0] sm:$0xf0]  ;;  %s1896_s7 = scalar_lea.hbm %s4286_s21, %s3029_s24 }
  0x9c   : > { %v2985_v2 = vld [vmem:[%s3706_s16 + $0x49c] sm:$0xf0]  ;;  %v373_v4 = vperm.slane %v371_v0, 0  ;;  %v374_v16 = vperm.slane %v371_v0, 1  ;;  %v2909_v60 = vld [vmem:[%s3706_s16 + $0x244] sm:$0xf] }
  0x9d   : > { %v2641_v7 = vor.u32 %v2985_v2, %v2640_v1  ;;  %v2096_v8 = vld [vmem:[%s3706_s16 + $0x40] sm:$0xf]  ;;  %1574 = vmatpush.bf16.msra.mxu1 %v2385_v6  ;;  %1647 = vmatpush.bf16.msrb.mxu3 %v2553_v47  ;;  %v382_v1 = vld [vmem:[%s3704_s25] sm:$0x7]  ;;  %v2488_v2 = vld [vmem:[%s3706_s16 + $0x348] sm:$0xf]  ;;  %v2485_v6 = vor.u32 %v2941_v54, %v2482_v55  ;;  %v2169_v47 = vor.u32 %v2866_v39, %v2168_v38 }
  0x9e   : > { %v2849_v9 = vld [vmem:[%s3706_s16 + $0x5c] sm:$0xf0]  ;;  %v384_v5 = vperm.slane %v382_v1, 0  ;;  %v2858_v54 = vld [vmem:[%s3706_s16 + $0xa4] sm:$0xf0]  ;;  %s1900_s30 = sshll.u32 %s1896_s7, 4  ;;  %s1901_s30 = int_to_ptr.hbm [resolvable:$true] %s1900_s30 }
  0x9f   : > { %v2352_v10 = vld [vmem:[%s3706_s16 + $0x240] sm:$0xf]  ;;  %v2097_v17 = vor.u32 %v2849_v9, %v2096_v8  ;;  %1587 = vmatpush.bf16.msra.mxu2 %v2641_v7  ;;  %v2933_v7 = vld [vmem:[%s3706_s16 + $0x304] sm:$0xf]  ;;  %v2392_v55 = vld [vmem:[%s3706_s16 + $0x288] sm:$0xf] }
  0xa0   : > { %v2913_v12 = vld [vmem:[%s3706_s16 + $0x25c] sm:$0xf0]  ;;  %v2450_v8 = vld [vmem:[%s3706_s16 + $0x320] sm:$0xf0]  ;;  %v2950_v38 = vld [vmem:[%s3706_s16 + $0x38c] sm:$0xf] }
  0xa1   : > { %v2608_v13 = vld [vmem:[%s3706_s16 + $0x440] sm:$0xf]  ;;  %v2353_v20 = vor.u32 %v2913_v12, %v2352_v10  ;;  %1562 = vmatpush.bf16.msra.mxu0 %v2097_v17  ;;  %v2997_v9 = vld [vmem:[%s3706_s16 + $0x504] sm:$0xf]  ;;  %v2741_v10 = vor.u32 %v3005_v56, %v2738_v59  ;;  %1648 = vmatpush.bf16.msrb.mxu3 %v2521_v62  ;;  %v2489_v17 = vor.u32 %v2946_v3, %v2488_v2  ;;  %v2922_v56 = vld [vmem:[%s3706_s16 + $0x2a4] sm:$0xf0] }
  0xa2   : > { %v2977_v14 = vld [vmem:[%s3706_s16 + $0x45c] sm:$0xf0]  ;;  %v2706_v12 = vld [vmem:[%s3706_s16 + $0x520] sm:$0xf0]  ;;  %v2453_v27 = vor.u32 %v2933_v7, %v2450_v8  ;;  %v2850_v2 = vld [vmem:[%s3706_s16 + $0x64] sm:$0xf0] }
  0xa3   : > { %v2064_v18 = vld [vmem:[%s3706_s16] sm:$0xf]  ;;  %v2609_v21 = vor.u32 %v2977_v14, %v2608_v13  ;;  %1575 = vmatpush.bf16.msra.mxu1 %v2353_v20  ;;  %v2200_v13 = vld [vmem:[%s3706_s16 + $0x108] sm:$0xf]  ;;  %v370_v20 = vld [vmem:[%s3690_s5 + $0x10] sm:$0xff]  ;;  %v2709_v28 = vor.u32 %v2997_v9, %v2706_v12  ;;  %s3316_s25 = sshra.s32 %s1901_s30, 4  ;;  %s3317_s25 = int_to_ptr.hbm [resolvable:$true] %s3316_s25 }
  0xa4   : > { %v2841_v19 = vld [vmem:[%s3706_s16 + $0x1c] sm:$0xf0]  ;;  %v2354_v61 = vld [vmem:[%s3706_s16 + $0x260] sm:$0xf0]  ;;  %v2360_v3 = vld [vmem:[%s3706_s16 + $0x248] sm:$0xf]  ;;  %p3323_p8 = scmp.lt.s32.totalorder %s3317_s25, %s4287_s29 }
  0xa5   : > { %v2320_v22 = vld [vmem:[%s3706_s16 + $0x200] sm:$0xf]  ;;  %v2065_v32 = vor.u32 %v2841_v19, %v2064_v18  ;;  %1588 = vmatpush.bf16.msra.mxu2 %v2609_v21  ;;  %v2874_v18 = vld [vmem:[%s3706_s16 + $0x124] sm:$0xf0]  ;;  %v385_v19 = vperm.slane %v382_v1, 1  ;;  %v375_v21 = vperm.slane %v371_v0, 2  ;;  %1649 = vmatpush.bf16.msrb.mxu3 %v2489_v17 }
  0xa6   : > { %v2905_v23 = vld [vmem:[%s3706_s16 + $0x21c] sm:$0xf0]  ;;  %v2201_v30 = vor.u32 %v2874_v18, %v2200_v13  ;;  %v2973_v62 = vld [vmem:[%s3706_s16 + $0x444] sm:$0xf]  ;;  %v2072_v12 = vld [vmem:[%s3706_s16 + $0x8] sm:$0xf] }
  0xa7   : > { %v2576_v24 = vld [vmem:[%s3706_s16 + $0x400] sm:$0xf]  ;;  %v2321_v36 = vor.u32 %v2905_v23, %v2320_v22  ;;  %1563 = vmatpush.bf16.msra.mxu0 %v2065_v32  ;;  %v386_v22 = vperm.slane %v382_v1, 2  ;;  %v2456_v23 = vld [vmem:[%s3706_s16 + $0x308] sm:$0xf]  ;;  %v381_v29 = vsub.f32 %v370_v20, %v375_v21  ;;  %s3318_s12 = scalar_lea.hbm %s3317_s25, 64 }
  0xa8   : > { %v2969_v26 = vld [vmem:[%s3706_s16 + $0x41c] sm:$0xf0]  ;;  %v2418_v32 = vld [vmem:[%s3706_s16 + $0x2e0] sm:$0xf0]  ;;  %v2104_v1 = vld [vmem:[%s3706_s16 + $0x48] sm:$0xf]  ;;  %p3319_p11 = scmp.ne.s32.totalorder %s3317_s25, %s3318_s12  ;;  %p3324_p4 = scmp.lt.s32.totalorder %s3322_s11, %s3318_s12 }
  0xa9   : > { %v2577_v37 = vor.u32 %v2969_v26, %v2576_v24  ;;  %1576 = vmatpush.bf16.msra.mxu1 %v2321_v36  ;;  %v368_v63 = vld [vmem:[%s3690_s5] sm:$0xff]  ;;  %v380_v26 = vsub.f32 %v369_v15, %v374_v16  ;;  %v392_v40 = vmul.f32 %v386_v22, %v381_v29  ;;  %v2421_v44 = vor.u32 %v2925_v31, %v2418_v32  ;;  %v2298_v21 = vld [vmem:[%s3706_s16 + $0x1e8] sm:$0xf0] }
  0xaa   : > { %v379_v14 = vsub.f32 %v368_v63, %v373_v4  ;;  %v2938_v24 = vld [vmem:[%s3706_s16 + $0x324] sm:$0xf0]  ;;  %v2393_v63 = vor.u32 %v2922_v56, %v2392_v55  ;;  %v2610_v0 = vld [vmem:[%s3706_s16 + $0x460] sm:$0xf0]  ;;  %v2105_v9 = vor.u32 %v2850_v2, %v2104_v1  ;;  %v2958_v22 = vld [vmem:[%s3706_s16 + $0x3cc] sm:$0xf]  ;;  %p3320_p6 = pnand %p3319_p11, %p3609_p7  ;;  %p3325_p9 = por %p3324_p4, %p3323_p8 }
  0xab   : > { %1589 = vmatpush.bf16.msra.mxu2 %v2577_v37  ;;  %1608 = vmatpush.bf16.msrb.mxu0 %v2549_v41  ;;  %v391_v35 = vmul.f32 %v385_v19, %v380_v26  ;;  %v2457_v36 = vor.u32 %v2938_v24, %v2456_v23  ;;  %v2674_v37 = vld [vmem:[%s3706_s16 + $0x4e0] sm:$0xf0]  ;;  %v2424_v41 = vld [vmem:[%s3706_s16 + $0x2c8] sm:$0xf]  ;;  %v3841_v45 = vpack.c.bf16 %v392_v40, %v392_v40  ;;  %v2894_v19 = vld [vmem:[%s3706_s16 + $0x1cc] sm:$0xf] }
  0xac   : > { %v390_v25 = vmul.f32 %v384_v5, %v379_v14  ;;  %v2677_v46 = vor.u32 %v2989_v33, %v2674_v37  ;;  %v2914_v4 = vld [vmem:[%s3706_s16 + $0x264] sm:$0xf0]  ;;  %v2357_v5 = vor.u32 %v2909_v60, %v2354_v61  ;;  %v2322_v7 = vld [vmem:[%s3706_s16 + $0x220] sm:$0xf0]  ;;  %v2613_v8 = vor.u32 %v2973_v62, %v2610_v0  ;;  %v2554_v23 = vld [vmem:[%s3706_s16 + $0x3e8] sm:$0xf0]  ;;  %p3321_p5 = pneg %p3320_p6 }
  0xad   : > { %1621 = vmatpush.bf16.msrb.mxu1 %v2805_v42  ;;  %v2930_v42 = vld [vmem:[%s3706_s16 + $0x2e4] sm:$0xf0]  ;;  %1650 = vmatpush.bf16.msrb.mxu3 %v2457_v36  ;;  %v2361_v13 = vor.u32 %v2914_v4, %v2360_v3  ;;  %v3022_v26 = vld [vmem:[%s3706_s16 + $0x5cc] sm:$0xf]  ;;  %v2557_v31 = vor.u32 %v2958_v22, %v2554_v23 }
  0xae   : > { %v3830_v34 = vpack.c.bf16 %v390_v25, %v390_v25  ;;  %v2425_v51 = vor.u32 %v2930_v42, %v2424_v41  ;;  %1590 = vmatmul.bf16.vlgmr.msra.gmra.mxu2 %v3841_v45  ;;  %v2842_v14 = vld [vmem:[%s3706_s16 + $0x24] sm:$0xf0]  ;;  %v2266_v37 = vld [vmem:[%s3706_s16 + $0x1a8] sm:$0xf0]  ;;  %p3326_p10 = pnand %p3325_p9, %p3321_p5 }
  0xaf   : > { %1634 = vmatpush.bf16.msrb.mxu2 %v2297_v43  ;;  %1609 = vmatpush.bf16.msrb.mxu0 %v2517_v53  ;;  %v3838_v43 = vpack.c.bf16 %v391_v35, %v391_v35  ;;  %v2136_v53 = vld [vmem:[%s3706_s16 + $0x88] sm:$0xf]  ;;  %v2073_v25 = vor.u32 %v2842_v14, %v2072_v12  ;;  %v2886_v35 = vld [vmem:[%s3706_s16 + $0x18c] sm:$0xf] }
  0xb0   : > { %1564 = vmatmul.bf16.vlgmr.msra.gmra.mxu0 %v3830_v34  ;;  %1603 = vmatmul.bf16.vlgmr.msra.gmra.mxu3 %v3830_v34  ;;  %v2137_v59 = vor.u32 %v2858_v54, %v2136_v53  ;;  %v2328_v15 = vld [vmem:[%s3706_s16 + $0x208] sm:$0xf]  ;;  %v2522_v39 = vld [vmem:[%s3706_s16 + $0x3a8] sm:$0xf0] }
  0xb1   : > { %1622 = vmatpush.bf16.msrb.mxu1 %v2773_v57  ;;  %v2389_v57 = vor.u32 %v2917_v48, %v2386_v49  ;;  %1651 = vmatpush.bf16.msrb.mxu3 %v2425_v51  ;;  %v2906_v16 = vld [vmem:[%s3706_s16 + $0x224] sm:$0xf0]  ;;  %v3014_v40 = vld [vmem:[%s3706_s16 + $0x58c] sm:$0xf] }
  0xb2   : > { %1577 = vmatmul.bf16.vlgmr.msra.gmra.mxu1 %v3838_v43  ;;  %v2808_v17 = vld [vmem:[%s3706_s16 + $0x5c8] sm:$0xf]  ;;  %v2778_v41 = vld [vmem:[%s3706_s16 + $0x5a8] sm:$0xf0] }
  0xb3   : > { %1635 = vmatpush.bf16.msrb.mxu2 %v2265_v58  ;;  %1610 = vmatpush.bf16.msrb.mxu0 %v2485_v6  ;;  %v2645_v58 = vor.u32 %v2981_v50, %v2642_v52  ;;  %v2901_v6 = vld [vmem:[%s3706_s16 + $0x204] sm:$0xf]  ;;  %v3026_v18 = vld [vmem:[%s3706_s16 + $0x5e4] sm:$0xf0]  ;;  %v2878_v49 = vld [vmem:[%s3706_s16 + $0x14c] sm:$0xf]  ;;  %v2781_v50 = vor.u32 %v3014_v40, %v2778_v41 }
  0xb4   : > { %v2325_v20 = vor.u32 %v2901_v6, %v2322_v7  ;;  %v2809_v29 = vor.u32 %v3026_v18, %v2808_v17  ;;  %v2776_v32 = vld [vmem:[%s3706_s16 + $0x588] sm:$0xf]  ;;  %v2234_v51 = vld [vmem:[%s3706_s16 + $0x168] sm:$0xf0] }
  0xb5   : > { %1623 = vmatpush.bf16.msrb.mxu1 %v2741_v10  ;;  %v2965_v10 = vld [vmem:[%s3706_s16 + $0x404] sm:$0xf]  ;;  %1652 = vmatpush.bf16.msrb.mxu3 %v2393_v63  ;;  %v3018_v33 = vld [vmem:[%s3706_s16 + $0x5a4] sm:$0xf0]  ;;  %v2942_v52 = vld [vmem:[%s3706_s16 + $0x34c] sm:$0xf] }
  0xb6   : > { %v2777_v42 = vor.u32 %v3018_v33, %v2776_v32  ;;  %v3010_v48 = vld [vmem:[%s3706_s16 + $0x564] sm:$0xf0]  ;;  %v2490_v53 = vld [vmem:[%s3706_s16 + $0x368] sm:$0xf0] }
  0xb7   : > { %1636 = vmatpush.bf16.msrb.mxu2 %v2233_v11  ;;  %1611 = vmatpush.bf16.msrb.mxu0 %v2453_v27  ;;  %v2578_v11 = vld [vmem:[%s3706_s16 + $0x420] sm:$0xf0]  ;;  %v2810_v27 = vld [vmem:[%s3706_s16 + $0x5e8] sm:$0xf0]  ;;  %v3002_v60 = vld [vmem:[%s3706_s16 + $0x524] sm:$0xf0] }
  0xb8   : > { %v2581_v24 = vor.u32 %v2965_v10, %v2578_v11  ;;  %v2813_v36 = vor.u32 %v3022_v26, %v2810_v27  ;;  %v3006_v54 = vld [vmem:[%s3706_s16 + $0x54c] sm:$0xf]  ;;  %v2680_v7 = vld [vmem:[%s3706_s16 + $0x4c8] sm:$0xf] }
  0xb9   : > { %1624 = vmatpush.bf16.msrb.mxu1 %v2709_v28  ;;  %1653 = vmatpush.bf16.msrb.mxu3 %v2361_v13  ;;  %v2329_v28 = vor.u32 %v2906_v16, %v2328_v15  ;;  %v2746_v55 = vld [vmem:[%s3706_s16 + $0x568] sm:$0xf0]  ;;  %v2978_v32 = vld [vmem:[%s3706_s16 + $0x464] sm:$0xf0] }
  0xba   : > { %v2870_v61 = vld [vmem:[%s3706_s16 + $0x10c] sm:$0xf]  ;;  %v2749_v62 = vor.u32 %v3006_v54, %v2746_v55  ;;  %v2304_v55 = vld [vmem:[%s3706_s16 + $0x1d0] sm:$0xf] }
  0xbb   : > { %1637 = vmatpush.bf16.msrb.mxu2 %v2201_v30  ;;  %1612 = vmatpush.bf16.msrb.mxu0 %v2421_v44  ;;  %v2301_v30 = vor.u32 %v2894_v19, %v2298_v21  ;;  %v2269_v44 = vor.u32 %v2886_v35, %v2266_v37  ;;  %v2202_v63 = vld [vmem:[%s3706_s16 + $0x128] sm:$0xf0]  ;;  %v2648_v19 = vld [vmem:[%s3706_s16 + $0x488] sm:$0xf] }
  0xbc   : > { %v2934_v0 = vld [vmem:[%s3706_s16 + $0x30c] sm:$0xf] }
  0xbd   : > { %1625 = vmatpush.bf16.msrb.mxu1 %v2677_v46  ;;  %1654 = vmatpush.bf16.msrb.mxu3 %v2329_v28  ;;  %v2525_v46 = vor.u32 %v2950_v38, %v2522_v39  ;;  %v2458_v1 = vld [vmem:[%s3706_s16 + $0x328] sm:$0xf0] }
  0xbe   : > { %v2998_v2 = vld [vmem:[%s3706_s16 + $0x50c] sm:$0xf]  ;;  %v2461_v6 = vor.u32 %v2934_v0, %v2458_v1  ;;  %v2895_v0 = vld [vmem:[%s3706_s16 + $0x1d4] sm:$0xf] }
  0xbf   : > { %1638 = vmatpush.bf16.msrb.mxu2 %v2169_v47  ;;  %1613 = vmatpush.bf16.msrb.mxu0 %v2389_v57  ;;  %v2744_v47 = vld [vmem:[%s3706_s16 + $0x548] sm:$0xf]  ;;  %v2237_v57 = vor.u32 %v2878_v49, %v2234_v51  ;;  %v2714_v3 = vld [vmem:[%s3706_s16 + $0x528] sm:$0xf0]  ;;  %v2306_v1 = vld [vmem:[%s3706_s16 + $0x1f0] sm:$0xf0] }
  0xc0   : > { %v2745_v56 = vor.u32 %v3010_v48, %v2744_v47  ;;  %1655 = vmatmul.bf16.vlgmr.msrb.gmra.mxu3 %v3838_v43  ;;  %v2717_v10 = vor.u32 %v2998_v2, %v2714_v3  ;;  %v2170_v11 = vld [vmem:[%s3706_s16 + $0xe8] sm:$0xf0] }
  0xc1   : > { %1626 = vmatpush.bf16.msrb.mxu1 %v2645_v58  ;;  %1699 = vmatpush.bf16.msra.mxu3 %v2813_v36  ;;  %v2493_v58 = vor.u32 %v2942_v52, %v2490_v53  ;;  %v2926_v12 = vld [vmem:[%s3706_s16 + $0x2cc] sm:$0xf] }
  0xc2   : > { %v2426_v13 = vld [vmem:[%s3706_s16 + $0x2e8] sm:$0xf0] }
  0xc3   : > { %1639 = vmatpush.bf16.msrb.mxu2 %v2137_v59  ;;  %1614 = vmatpush.bf16.msrb.mxu0 %v2357_v5  ;;  %v2712_v59 = vld [vmem:[%s3706_s16 + $0x508] sm:$0xf]  ;;  %v2205_v5 = vor.u32 %v2870_v61, %v2202_v63  ;;  %v2990_v14 = vld [vmem:[%s3706_s16 + $0x4cc] sm:$0xf]  ;;  %v2429_v18 = vor.u32 %v2926_v12, %v2426_v13  ;;  %v3027_v61 = vld [vmem:[%s3706_s16 + $0x5ec] sm:$0xf0] }
  0xc4   : > { %v2713_v4 = vor.u32 %v3002_v60, %v2712_v59  ;;  %v2682_v15 = vld [vmem:[%s3706_s16 + $0x4e8] sm:$0xf0]  ;;  %v2963_v59 = vld [vmem:[%s3706_s16 + $0x3ec] sm:$0xf0]  ;;  %v2887_v13 = vld [vmem:[%s3706_s16 + $0x194] sm:$0xf] }
  0xc5   : > { %1627 = vmatpush.bf16.msrb.mxu1 %v2613_v8  ;;  %1700 = vmatpush.bf16.msra.mxu3 %v2781_v50  ;;  %v2994_v8 = vld [vmem:[%s3706_s16 + $0x4e4] sm:$0xf0]  ;;  %v2854_v21 = vld [vmem:[%s3706_s16 + $0x8c] sm:$0xf]  ;;  %v2685_v22 = vor.u32 %v2990_v14, %v2682_v15  ;;  %v2816_v60 = vld [vmem:[%s3706_s16 + $0x5d0] sm:$0xf] }
  0xc6   : > { %v2681_v16 = vor.u32 %v2994_v8, %v2680_v7  ;;  %v2138_v23 = vld [vmem:[%s3706_s16 + $0xa8] sm:$0xf0]  ;;  %v2891_v7 = vld [vmem:[%s3706_s16 + $0x1ac] sm:$0xf0]  ;;  %v2274_v14 = vld [vmem:[%s3706_s16 + $0x1b0] sm:$0xf0] }
  0xc7   : > { %1640 = vmatpush.bf16.msrb.mxu2 %v2105_v9  ;;  %1615 = vmatpush.bf16.msrb.mxu0 %v2325_v20  ;;  %v2862_v9 = vld [vmem:[%s3706_s16 + $0xcc] sm:$0xf]  ;;  %v2986_v20 = vld [vmem:[%s3706_s16 + $0x4a4] sm:$0xf0]  ;;  %v2528_v8 = vld [vmem:[%s3706_s16 + $0x390] sm:$0xf] }
  0xc8   : > { %v2173_v17 = vor.u32 %v2862_v9, %v2170_v11  ;;  %v2982_v26 = vld [vmem:[%s3706_s16 + $0x48c] sm:$0xf]  ;;  %v2649_v28 = vor.u32 %v2986_v20, %v2648_v19  ;;  %v2309_v9 = vor.u32 %v2895_v0, %v2306_v1  ;;  %v2784_v11 = vld [vmem:[%s3706_s16 + $0x590] sm:$0xf]  ;;  %v2855_v0 = vld [vmem:[%s3706_s16 + $0x94] sm:$0xf] }
  0xc9   : > { %1628 = vmatpush.bf16.msrb.mxu1 %v2581_v24  ;;  %1701 = vmatpush.bf16.msra.mxu3 %v2749_v62  ;;  %v2918_v24 = vld [vmem:[%s3706_s16 + $0x28c] sm:$0xf]  ;;  %v3019_v12 = vld [vmem:[%s3706_s16 + $0x5ac] sm:$0xf0]  ;;  %v2146_v1 = vld [vmem:[%s3706_s16 + $0xb0] sm:$0xf0] }
  0xca   : > { %1616 = vmatmul.bf16.vlgmr.msrb.gmra.mxu0 %v3838_v43  ;;  %v2650_v27 = vld [vmem:[%s3706_s16 + $0x4a8] sm:$0xf0]  ;;  %v2883_v19 = vld [vmem:[%s3706_s16 + $0x16c] sm:$0xf0] }
  0xcb   : > { %1641 = vmatpush.bf16.msrb.mxu2 %v2073_v25  ;;  %1660 = vmatpush.bf16.msra.mxu0 %v2809_v29  ;;  %v2394_v25 = vld [vmem:[%s3706_s16 + $0x2a8] sm:$0xf0]  ;;  %v2141_v29 = vor.u32 %v2854_v21, %v2138_v23  ;;  %v2653_v35 = vor.u32 %v2982_v26, %v2650_v27  ;;  %v2496_v20 = vld [vmem:[%s3706_s16 + $0x350] sm:$0xf]  ;;  %v2277_v21 = vor.u32 %v2887_v13, %v2274_v14  ;;  %v2242_v26 = vld [vmem:[%s3706_s16 + $0x170] sm:$0xf0] }
  0xcc   : > { %1629 = vmatmul.bf16.vlgmr.msrb.gmra.mxu1 %v3841_v45  ;;  %v2846_v33 = vld [vmem:[%s3706_s16 + $0x4c] sm:$0xf]  ;;  %v2752_v23 = vld [vmem:[%s3706_s16 + $0x550] sm:$0xf]  ;;  %v2114_v13 = vld [vmem:[%s3706_s16 + $0x70] sm:$0xf0] }
  0xcd   : > { %1673 = vmatpush.bf16.msra.mxu1 %v2301_v30  ;;  %1702 = vmatpush.bf16.msra.mxu3 %v2717_v10  ;;  %v2397_v30 = vor.u32 %v2918_v24, %v2394_v25  ;;  %v2106_v36 = vld [vmem:[%s3706_s16 + $0x68] sm:$0xf0]  ;;  %v2955_v10 = vld [vmem:[%s3706_s16 + $0x3ac] sm:$0xf0]  ;;  %v2879_v25 = vld [vmem:[%s3706_s16 + $0x154] sm:$0xf] }
  0xce   : > { %1642 = vmatmul.bf16.vlgmr.msrb.gmra.mxu2 %v3830_v34  ;;  %v2910_v37 = vld [vmem:[%s3706_s16 + $0x24c] sm:$0xf]  ;;  %v3011_v24 = vld [vmem:[%s3706_s16 + $0x56c] sm:$0xf0] }
  0xcf   : > { %1686 = vmatpush.bf16.msra.mxu2 %v2557_v31  ;;  %1661 = vmatpush.bf16.msra.mxu0 %v2777_v42  ;;  %v2616_v31 = vld [vmem:[%s3706_s16 + $0x448] sm:$0xf]  ;;  %v2362_v38 = vld [vmem:[%s3706_s16 + $0x268] sm:$0xf0] }
  0xd0   : > { %v2974_v39 = vld [vmem:[%s3706_s16 + $0x44c] sm:$0xf]  ;;  %v2617_v41 = vor.u32 %v2978_v32, %v2616_v31  ;;  %v2584_v42 = vld [vmem:[%s3706_s16 + $0x408] sm:$0xf]  ;;  %v2365_v47 = vor.u32 %v2910_v37, %v2362_v38  ;;  %v2875_v31 = vld [vmem:[%s3706_s16 + $0x12c] sm:$0xf0] }
  0xd1   : > { %1674 = vmatpush.bf16.msra.mxu1 %v2269_v44  ;;  %1703 = vmatpush.bf16.msra.mxu3 %v2685_v22  ;;  %v2618_v40 = vld [vmem:[%s3706_s16 + $0x468] sm:$0xf0]  ;;  %v2970_v44 = vld [vmem:[%s3706_s16 + $0x424] sm:$0xf0]  ;;  %v2947_v22 = vld [vmem:[%s3706_s16 + $0x36c] sm:$0xf0] }
  0xd2   : > { %v2838_v48 = vld [vmem:[%s3706_s16 + $0xc] sm:$0xf]  ;;  %v2621_v51 = vor.u32 %v2974_v39, %v2618_v40  ;;  %v2464_v32 = vld [vmem:[%s3706_s16 + $0x310] sm:$0xf]  ;;  %v2871_v38 = vld [vmem:[%s3706_s16 + $0x114] sm:$0xf] }
  0xd3   : > { %1687 = vmatpush.bf16.msra.mxu2 %v2525_v46  ;;  %1662 = vmatpush.bf16.msra.mxu0 %v2745_v56  ;;  %v2109_v46 = vor.u32 %v2846_v33, %v2106_v36  ;;  %v2074_v49 = vld [vmem:[%s3706_s16 + $0x28] sm:$0xf0]  ;;  %v2899_v56 = vld [vmem:[%s3706_s16 + $0x1ec] sm:$0xf0]  ;;  %v2245_v33 = vor.u32 %v2879_v25, %v2242_v26  ;;  %v2210_v39 = vld [vmem:[%s3706_s16 + $0x130] sm:$0xf0] }
  0xd4   : > { %v2902_v50 = vld [vmem:[%s3706_s16 + $0x20c] sm:$0xf]  ;;  %v2077_v62 = vor.u32 %v2838_v48, %v2074_v49  ;;  %v2305_v3 = vor.u32 %v2899_v56, %v2304_v55  ;;  %v2720_v36 = vld [vmem:[%s3706_s16 + $0x510] sm:$0xf]  ;;  %v2213_v48 = vor.u32 %v2871_v38, %v2210_v39  ;;  %v2082_v25 = vld [vmem:[%s3706_s16 + $0x30] sm:$0xf0] }
  0xd5   : > { %1675 = vmatpush.bf16.msra.mxu1 %v2237_v57  ;;  %1704 = vmatpush.bf16.msra.mxu3 %v2653_v35  ;;  %v2330_v52 = vld [vmem:[%s3706_s16 + $0x228] sm:$0xf0]  ;;  %v2560_v57 = vld [vmem:[%s3706_s16 + $0x3d0] sm:$0xf]  ;;  %v2959_v26 = vld [vmem:[%s3706_s16 + $0x3d4] sm:$0xf] }
  0xd6   : > { %v2966_v53 = vld [vmem:[%s3706_s16 + $0x40c] sm:$0xf]  ;;  %v2333_v63 = vor.u32 %v2902_v50, %v2330_v52  ;;  %v2939_v35 = vld [vmem:[%s3706_s16 + $0x32c] sm:$0xf0]  ;;  %v2863_v52 = vld [vmem:[%s3706_s16 + $0xd4] sm:$0xf] }
  0xd7   : > { %1688 = vmatpush.bf16.msra.mxu2 %v2493_v58  ;;  %1663 = vmatpush.bf16.msra.mxu0 %v2713_v4  ;;  %v2586_v54 = vld [vmem:[%s3706_s16 + $0x428] sm:$0xf0]  ;;  %v2585_v58 = vor.u32 %v2970_v44, %v2584_v42  ;;  %v2561_v4 = vor.u32 %v2963_v59, %v2560_v57  ;;  %v3003_v37 = vld [vmem:[%s3706_s16 + $0x52c] sm:$0xf0] }
  0xd8   : > { %v2589_v2 = vor.u32 %v2966_v53, %v2586_v54  ;;  %v2721_v42 = vor.u32 %v3003_v37, %v2720_v36  ;;  %v2176_v44 = vld [vmem:[%s3706_s16 + $0xd0] sm:$0xf]  ;;  %v2178_v53 = vld [vmem:[%s3706_s16 + $0xf0] sm:$0xf0]  ;;  %v2568_v36 = vld [vmem:[%s3706_s16 + $0x3d8] sm:$0xf] }
  0xd9   : > { %1676 = vmatpush.bf16.msra.mxu1 %v2205_v5  ;;  %1705 = vmatpush.bf16.msra.mxu3 %v2621_v51  ;;  %v2817_v5 = vor.u32 %v3027_v61, %v2816_v60  ;;  %v2931_v49 = vld [vmem:[%s3706_s16 + $0x2ec] sm:$0xf0]  ;;  %v2181_v60 = vor.u32 %v2863_v52, %v2178_v53  ;;  %v2964_v37 = vld [vmem:[%s3706_s16 + $0x3f4] sm:$0xf0] }
  0xda   : > { %v2688_v50 = vld [vmem:[%s3706_s16 + $0x4d0] sm:$0xf]  ;;  %v2956_v52 = vld [vmem:[%s3706_s16 + $0x3b4] sm:$0xf0] }
  0xdb   : > { %1689 = vmatpush.bf16.msra.mxu2 %v2461_v6  ;;  %1664 = vmatpush.bf16.msra.mxu0 %v2681_v16  ;;  %v2272_v6 = vld [vmem:[%s3706_s16 + $0x190] sm:$0xf]  ;;  %v2529_v16 = vor.u32 %v2955_v10, %v2528_v8  ;;  %v2149_v8 = vor.u32 %v2855_v0, %v2146_v1  ;;  %v2948_v0 = vld [vmem:[%s3706_s16 + $0x374] sm:$0xf0] }
  0xdc   : > { %v2273_v15 = vor.u32 %v2891_v7, %v2272_v6  ;;  %v2995_v51 = vld [vmem:[%s3706_s16 + $0x4ec] sm:$0xf0] }
  0xdd   : > { %1677 = vmatpush.bf16.msra.mxu1 %v2173_v17  ;;  %1706 = vmatpush.bf16.msra.mxu3 %v2589_v2  ;;  %v2785_v17 = vor.u32 %v3019_v12, %v2784_v11  ;;  %v2689_v56 = vor.u32 %v2995_v51, %v2688_v50  ;;  %v2144_v57 = vld [vmem:[%s3706_s16 + $0x90] sm:$0xf]  ;;  %v2847_v12 = vld [vmem:[%s3706_s16 + $0x54] sm:$0xf]  ;;  %v2892_v50 = vld [vmem:[%s3706_s16 + $0x1b4] sm:$0xf0] }
  0xde   : > { %v2400_v59 = vld [vmem:[%s3706_s16 + $0x290] sm:$0xf]  ;;  %v2536_v51 = vld [vmem:[%s3706_s16 + $0x398] sm:$0xf] }
  0xdf   : > { %1690 = vmatpush.bf16.msra.mxu2 %v2429_v18  ;;  %1665 = vmatpush.bf16.msra.mxu0 %v2649_v28  ;;  %v2240_v18 = vld [vmem:[%s3706_s16 + $0x150] sm:$0xf]  ;;  %v2497_v28 = vor.u32 %v2947_v22, %v2496_v20  ;;  %v2117_v22 = vor.u32 %v2847_v12, %v2114_v13  ;;  %v2940_v12 = vld [vmem:[%s3706_s16 + $0x334] sm:$0xf0] }
  0xe0   : > { %1707 = vmatmul.bf16.vlgmr.msra.gmra.mxu3 %v3841_v45  ;;  %v2241_v27 = vor.u32 %v2883_v19, %v2240_v18  ;;  %v2923_v61 = vld [vmem:[%s3706_s16 + $0x2ac] sm:$0xf0] }
  0xe1   : > { %1678 = vmatpush.bf16.msra.mxu1 %v2141_v29  ;;  %1751 = vmatpush.bf16.msrb.mxu3 %v2309_v9  ;;  %v2753_v29 = vor.u32 %v3011_v24, %v2752_v23  ;;  %v2851_v6 = vld [vmem:[%s3706_s16 + $0x6c] sm:$0xf0]  ;;  %v2839_v24 = vld [vmem:[%s3706_s16 + $0x14] sm:$0xf] }
  0xe2   : > { %v2368_v7 = vld [vmem:[%s3706_s16 + $0x250] sm:$0xf]  ;;  %v2085_v38 = vor.u32 %v2839_v24, %v2082_v25  ;;  %v2932_v24 = vld [vmem:[%s3706_s16 + $0x2f4] sm:$0xf0] }
  0xe3   : > { %1691 = vmatpush.bf16.msra.mxu2 %v2397_v30  ;;  %1666 = vmatpush.bf16.msra.mxu0 %v2617_v41  ;;  %v2208_v30 = vld [vmem:[%s3706_s16 + $0x110] sm:$0xf]  ;;  %v2465_v41 = vor.u32 %v2939_v35, %v2464_v32  ;;  %v2900_v32 = vld [vmem:[%s3706_s16 + $0x1f4] sm:$0xf0] }
  0xe4   : > { %v2209_v40 = vor.u32 %v2875_v31, %v2208_v30  ;;  %v2915_v9 = vld [vmem:[%s3706_s16 + $0x26c] sm:$0xf0]  ;;  %v2818_v30 = vld [vmem:[%s3706_s16 + $0x5f0] sm:$0xf0]  ;;  %v2312_v31 = vld [vmem:[%s3706_s16 + $0x1d8] sm:$0xf] }
  0xe5   : > { %1679 = vmatpush.bf16.msra.mxu1 %v2109_v46  ;;  %1752 = vmatpush.bf16.msrb.mxu3 %v2277_v21  ;;  %v2867_v46 = vld [vmem:[%s3706_s16 + $0xec] sm:$0xf0] }
  0xe6   : > { %v2177_v54 = vor.u32 %v2867_v46, %v2176_v44  ;;  %v2624_v10 = vld [vmem:[%s3706_s16 + $0x450] sm:$0xf]  ;;  %v2530_v44 = vld [vmem:[%s3706_s16 + $0x3b0] sm:$0xf0] }
  0xe7   : > { %1692 = vmatpush.bf16.msra.mxu2 %v2365_v47  ;;  %1667 = vmatpush.bf16.msra.mxu0 %v2585_v58  ;;  %v2432_v47 = vld [vmem:[%s3706_s16 + $0x2d0] sm:$0xf]  ;;  %v3015_v46 = vld [vmem:[%s3706_s16 + $0x594] sm:$0xf] }
  0xe8   : > { %v2433_v55 = vor.u32 %v2931_v49, %v2432_v47  ;;  %v2859_v58 = vld [vmem:[%s3706_s16 + $0xac] sm:$0xf0]  ;;  %v2569_v47 = vor.u32 %v2964_v37, %v2568_v36  ;;  %v2280_v49 = vld [vmem:[%s3706_s16 + $0x198] sm:$0xf] }
  0xe9   : > { %1680 = vmatpush.bf16.msra.mxu1 %v2077_v62  ;;  %1753 = vmatpush.bf16.msrb.mxu3 %v2245_v33  ;;  %v2656_v62 = vld [vmem:[%s3706_s16 + $0x490] sm:$0xf]  ;;  %v2145_v2 = vor.u32 %v2859_v58, %v2144_v57  ;;  %v2498_v57 = vld [vmem:[%s3706_s16 + $0x370] sm:$0xf0]  ;;  %v2408_v36 = vld [vmem:[%s3706_s16 + $0x298] sm:$0xf] }
  0xea   : > { %1668 = vmatmul.bf16.vlgmr.msra.gmra.mxu0 %v3841_v45  ;;  %v2979_v11 = vld [vmem:[%s3706_s16 + $0x46c] sm:$0xf0]  ;;  %v3007_v58 = vld [vmem:[%s3706_s16 + $0x554] sm:$0xf]  ;;  %v2924_v37 = vld [vmem:[%s3706_s16 + $0x2b4] sm:$0xf0] }
  0xeb   : > { %1693 = vmatpush.bf16.msra.mxu2 %v2333_v63  ;;  %1712 = vmatpush.bf16.msrb.mxu0 %v2305_v3  ;;  %v2987_v63 = vld [vmem:[%s3706_s16 + $0x4ac] sm:$0xf0]  ;;  %v2401_v3 = vor.u32 %v2923_v61, %v2400_v59  ;;  %v2625_v18 = vor.u32 %v2979_v11, %v2624_v10  ;;  %v2537_v59 = vor.u32 %v2956_v52, %v2536_v51  ;;  %v2248_v61 = vld [vmem:[%s3706_s16 + $0x158] sm:$0xf] }
  0xec   : > { %1681 = vmatmul.bf16.vlgmr.msra.gmra.mxu1 %v3830_v34  ;;  %v2336_v19 = vld [vmem:[%s3706_s16 + $0x210] sm:$0xf]  ;;  %v2876_v10 = vld [vmem:[%s3706_s16 + $0x134] sm:$0xf0] }
  0xed   : > { %1725 = vmatpush.bf16.msrb.mxu1 %v2561_v4  ;;  %1754 = vmatpush.bf16.msrb.mxu3 %v2213_v48  ;;  %v2657_v4 = vor.u32 %v2987_v63, %v2656_v62  ;;  %v2907_v20 = vld [vmem:[%s3706_s16 + $0x22c] sm:$0xf0]  ;;  %v2786_v48 = vld [vmem:[%s3706_s16 + $0x5b0] sm:$0xf0]  ;;  %v2884_v62 = vld [vmem:[%s3706_s16 + $0x174] sm:$0xf0] }
  0xee   : > { %1694 = vmatmul.bf16.vlgmr.msra.gmra.mxu2 %v3838_v43  ;;  %v2592_v21 = vld [vmem:[%s3706_s16 + $0x410] sm:$0xf]  ;;  %v2337_v33 = vor.u32 %v2907_v20, %v2336_v19  ;;  %v2504_v63 = vld [vmem:[%s3706_s16 + $0x358] sm:$0xf]  ;;  %v2690_v20 = vld [vmem:[%s3706_s16 + $0x4f0] sm:$0xf0] }
  0xef   : > { %1738 = vmatpush.bf16.msrb.mxu2 %v2817_v5  ;;  %1713 = vmatpush.bf16.msrb.mxu0 %v2273_v15  ;;  %v2112_v5 = vld [vmem:[%s3706_s16 + $0x50] sm:$0xf]  ;;  %v2472_v11 = vld [vmem:[%s3706_s16 + $0x318] sm:$0xf] }
  0xf0   : > { %v2113_v14 = vor.u32 %v2851_v6, %v2112_v5  ;;  %v2080_v15 = vld [vmem:[%s3706_s16 + $0x10] sm:$0xf]  ;;  %v2466_v5 = vld [vmem:[%s3706_s16 + $0x330] sm:$0xf0]  ;;  %v2473_v19 = vor.u32 %v2940_v12, %v2472_v11  ;;  %v2916_v51 = vld [vmem:[%s3706_s16 + $0x274] sm:$0xf0] }
  0xf1   : > { %1726 = vmatpush.bf16.msrb.mxu1 %v2529_v16  ;;  %1755 = vmatpush.bf16.msrb.mxu3 %v2181_v60  ;;  %v2843_v16 = vld [vmem:[%s3706_s16 + $0x2c] sm:$0xf0]  ;;  %v2754_v60 = vld [vmem:[%s3706_s16 + $0x570] sm:$0xf0] }
  0xf2   : > { %v2971_v23 = vld [vmem:[%s3706_s16 + $0x42c] sm:$0xf0]  ;;  %v2999_v6 = vld [vmem:[%s3706_s16 + $0x514] sm:$0xf] }
  0xf3   : > { %1739 = vmatpush.bf16.msrb.mxu2 %v2785_v17  ;;  %1714 = vmatpush.bf16.msrb.mxu0 %v2241_v27  ;;  %v2369_v17 = vor.u32 %v2915_v9, %v2368_v7  ;;  %v2562_v27 = vld [vmem:[%s3706_s16 + $0x3f0] sm:$0xf0]  ;;  %v2593_v35 = vor.u32 %v2971_v23, %v2592_v21  ;;  %v2505_v7 = vor.u32 %v2948_v0, %v2504_v63  ;;  %v2216_v9 = vld [vmem:[%s3706_s16 + $0x118] sm:$0xf] }
  0xf4   : > { %v2565_v39 = vor.u32 %v2959_v26, %v2562_v27  ;;  %v2184_v21 = vld [vmem:[%s3706_s16 + $0xd8] sm:$0xf] }
  0xf5   : > { %1727 = vmatpush.bf16.msrb.mxu1 %v2497_v28  ;;  %1756 = vmatpush.bf16.msrb.mxu3 %v2149_v8  ;;  %v3023_v28 = vld [vmem:[%s3706_s16 + $0x5d4] sm:$0xf]  ;;  %v2440_v23 = vld [vmem:[%s3706_s16 + $0x2d8] sm:$0xf] }
  0xf6   : > { %v2722_v8 = vld [vmem:[%s3706_s16 + $0x530] sm:$0xf0]  ;;  %v2908_v63 = vld [vmem:[%s3706_s16 + $0x234] sm:$0xf0] }
  0xf7   : > { %1740 = vmatpush.bf16.msrb.mxu2 %v2753_v29  ;;  %1715 = vmatpush.bf16.msrb.mxu0 %v2209_v40  ;;  %v2081_v29 = vor.u32 %v2843_v16, %v2080_v15  ;;  %v2821_v40 = vor.u32 %v3023_v28, %v2818_v30  ;;  %v2217_v15 = vor.u32 %v2876_v10, %v2216_v9  ;;  %v2927_v16 = vld [vmem:[%s3706_s16 + $0x2d4] sm:$0xf]  ;;  %v2824_v0 = vld [vmem:[%s3706_s16 + $0x5d8] sm:$0xf]  ;;  %v3024_v9 = vld [vmem:[%s3706_s16 + $0x5dc] sm:$0xf] }
  0xf8   : > { %v2919_v28 = vld [vmem:[%s3706_s16 + $0x294] sm:$0xf]  ;;  %v2826_v10 = vld [vmem:[%s3706_s16 + $0x5f8] sm:$0xf0] }
  0xf9   : > { %1728 = vmatpush.bf16.msrb.mxu1 %v2465_v41  ;;  %1757 = vmatpush.bf16.msrb.mxu3 %v2117_v22  ;;  %v2313_v41 = vor.u32 %v2900_v32, %v2312_v31  ;;  %v2868_v22 = vld [vmem:[%s3706_s16 + $0xf4] sm:$0xf0]  ;;  %v2983_v30 = vld [vmem:[%s3706_s16 + $0x494] sm:$0xf]  ;;  %v2441_v31 = vor.u32 %v2932_v24, %v2440_v23  ;;  %v2794_v23 = vld [vmem:[%s3706_s16 + $0x5b8] sm:$0xf0] }
  0xfa   : > { %v2185_v27 = vor.u32 %v2868_v22, %v2184_v21  ;;  %v2658_v32 = vld [vmem:[%s3706_s16 + $0x4b0] sm:$0xf0]  ;;  %v2538_v21 = vld [vmem:[%s3706_s16 + $0x3b8] sm:$0xf0] }
  0xfb   : > { %1741 = vmatpush.bf16.msrb.mxu2 %v2721_v42  ;;  %1716 = vmatpush.bf16.msrb.mxu0 %v2177_v54  ;;  %v2951_v42 = vld [vmem:[%s3706_s16 + $0x394] sm:$0xf]  ;;  %v2789_v54 = vor.u32 %v3015_v46, %v2786_v48  ;;  %v2409_v46 = vor.u32 %v2924_v37, %v2408_v36  ;;  %v2120_v48 = vld [vmem:[%s3706_s16 + $0x58] sm:$0xf]  ;;  %v3016_v22 = vld [vmem:[%s3706_s16 + $0x59c] sm:$0xf] }
  0xfc   : > { %v2533_v53 = vor.u32 %v2951_v42, %v2530_v44  ;;  %v2370_v42 = vld [vmem:[%s3706_s16 + $0x270] sm:$0xf0]  ;;  %v2762_v36 = vld [vmem:[%s3706_s16 + $0x578] sm:$0xf0] }
  0xfd   : > { %1729 = vmatpush.bf16.msrb.mxu1 %v2433_v55  ;;  %1758 = vmatpush.bf16.msrb.mxu3 %v2085_v38  ;;  %v2281_v55 = vor.u32 %v2892_v50, %v2280_v49  ;;  %v2975_v44 = vld [vmem:[%s3706_s16 + $0x454] sm:$0xf]  ;;  %v2852_v49 = vld [vmem:[%s3706_s16 + $0x74] sm:$0xf0] }
  0xfe   : > { %v2376_v50 = vld [vmem:[%s3706_s16 + $0x258] sm:$0xf] }
  0xff   : > { %1742 = vmatpush.bf16.msrb.mxu2 %v2689_v56  ;;  %1717 = vmatpush.bf16.msrb.mxu0 %v2145_v2  ;;  %v2943_v56 = vld [vmem:[%s3706_s16 + $0x354] sm:$0xf]  ;;  %v2757_v2 = vor.u32 %v3007_v58, %v2754_v60  ;;  %v2377_v60 = vor.u32 %v2916_v51, %v2376_v50  ;;  %v2730_v50 = vld [vmem:[%s3706_s16 + $0x538] sm:$0xf0] }
 0x100   : > { %v2501_v1 = vor.u32 %v2943_v56, %v2498_v57  ;;  %1759 = vmatmul.bf16.vlgmr.msrb.gmra.mxu3 %v3830_v34  ;;  %v2121_v56 = vor.u32 %v2852_v49, %v2120_v48  ;;  %v2967_v57 = vld [vmem:[%s3706_s16 + $0x414] sm:$0xf]  ;;  %v2474_v48 = vld [vmem:[%s3706_s16 + $0x338] sm:$0xf0] }
 0x101   : > { %1730 = vmatpush.bf16.msrb.mxu1 %v2401_v3  ;;  %1803 = vmatpush.bf16.msra.mxu3 %v2569_v47  ;;  %v2249_v3 = vor.u32 %v2884_v62, %v2248_v61  ;;  %v2626_v47 = vld [vmem:[%s3706_s16 + $0x470] sm:$0xf0]  ;;  %v2844_v61 = vld [vmem:[%s3706_s16 + $0x34] sm:$0xf0]  ;;  %v3000_v49 = vld [vmem:[%s3706_s16 + $0x51c] sm:$0xf] }
 0x102   : > { %v2594_v58 = vld [vmem:[%s3706_s16 + $0x430] sm:$0xf0]  ;;  %v2344_v62 = vld [vmem:[%s3706_s16 + $0x218] sm:$0xf] }
 0x103   : > { %1743 = vmatpush.bf16.msrb.mxu2 %v2657_v4  ;;  %1718 = vmatpush.bf16.msrb.mxu0 %v2113_v14  ;;  %v2935_v4 = vld [vmem:[%s3706_s16 + $0x314] sm:$0xf]  ;;  %v2725_v14 = vor.u32 %v2999_v6, %v2722_v8  ;;  %v2570_v6 = vld [vmem:[%s3706_s16 + $0x3f8] sm:$0xf0]  ;;  %v2345_v11 = vor.u32 %v2908_v63, %v2344_v62 }
 0x104   : > { %v2469_v13 = vor.u32 %v2935_v4, %v2466_v5  ;;  %v2314_v4 = vld [vmem:[%s3706_s16 + $0x1f8] sm:$0xf0] }
 0x105   : > { %1731 = vmatpush.bf16.msrb.mxu1 %v2369_v17  ;;  %1804 = vmatpush.bf16.msra.mxu3 %v2537_v59  ;;  %v2434_v17 = vld [vmem:[%s3706_s16 + $0x2f0] sm:$0xf0]  ;;  %v2088_v59 = vld [vmem:[%s3706_s16 + $0x18] sm:$0xf]  ;;  %v2960_v5 = vld [vmem:[%s3706_s16 + $0x3dc] sm:$0xf] }
 0x106   : > { %v2437_v25 = vor.u32 %v2927_v16, %v2434_v17  ;;  %v2089_v8 = vor.u32 %v2844_v61, %v2088_v59  ;;  %v3020_v16 = vld [vmem:[%s3706_s16 + $0x5b4] sm:$0xf0]  ;;  %v2888_v17 = vld [vmem:[%s3706_s16 + $0x19c] sm:$0xf] }
 0x107   : > { %1744 = vmatpush.bf16.msrb.mxu2 %v2625_v18  ;;  %1719 = vmatpush.bf16.msrb.mxu0 %v2081_v29  ;;  %v2991_v18 = vld [vmem:[%s3706_s16 + $0x4d4] sm:$0xf]  ;;  %v2928_v59 = vld [vmem:[%s3706_s16 + $0x2dc] sm:$0xf] }
 0x108   : > { %v2693_v26 = vor.u32 %v2991_v18, %v2690_v20  ;;  %v2402_v29 = vld [vmem:[%s3706_s16 + $0x2b0] sm:$0xf0]  ;;  %v2829_v18 = vor.u32 %v3024_v9, %v2826_v10  ;;  %v2952_v20 = vld [vmem:[%s3706_s16 + $0x39c] sm:$0xf] }
 0x109   : > { %1732 = vmatpush.bf16.msrb.mxu1 %v2337_v33  ;;  %1805 = vmatpush.bf16.msra.mxu3 %v2505_v7  ;;  %v2152_v33 = vld [vmem:[%s3706_s16 + $0x98] sm:$0xf]  ;;  %v2405_v38 = vor.u32 %v2919_v28, %v2402_v29  ;;  %v2597_v7 = vor.u32 %v2967_v57, %v2594_v58  ;;  %v2880_v29 = vld [vmem:[%s3706_s16 + $0x15c] sm:$0xf]  ;;  %v2733_v57 = vor.u32 %v3000_v49, %v2730_v50 }
 0x10a   : > { %1720 = vmatmul.bf16.vlgmr.msrb.gmra.mxu0 %v3830_v34  ;;  %v3012_v28 = vld [vmem:[%s3706_s16 + $0x574] sm:$0xf0]  ;;  %v2186_v58 = vld [vmem:[%s3706_s16 + $0xf8] sm:$0xf0] }
 0x10b   : > { %1745 = vmatpush.bf16.msrb.mxu2 %v2593_v35  ;;  %1764 = vmatpush.bf16.msra.mxu0 %v2565_v39  ;;  %v2860_v35 = vld [vmem:[%s3706_s16 + $0xb4] sm:$0xf0]  ;;  %v2661_v39 = vor.u32 %v2983_v30, %v2658_v32  ;;  %v2797_v30 = vor.u32 %v3016_v22, %v2794_v23  ;;  %v2944_v32 = vld [vmem:[%s3706_s16 + $0x35c] sm:$0xf] }
 0x10c   : > { %1733 = vmatmul.bf16.vlgmr.msrb.gmra.mxu1 %v3838_v43  ;;  %v2992_v61 = vld [vmem:[%s3706_s16 + $0x4dc] sm:$0xf] }
 0x10d   : > { %1777 = vmatpush.bf16.msra.mxu1 %v2821_v40  ;;  %1806 = vmatpush.bf16.msra.mxu3 %v2473_v19  ;;  %v2153_v40 = vor.u32 %v2860_v35, %v2152_v33  ;;  %v2282_v19 = vld [vmem:[%s3706_s16 + $0x1b8] sm:$0xf0] }
 0x10e   : > { %1746 = vmatmul.bf16.vlgmr.msrb.gmra.mxu2 %v3841_v45  ;;  %v2506_v33 = vld [vmem:[%s3706_s16 + $0x378] sm:$0xf0] }
 0x10f   : > { %1790 = vmatpush.bf16.msra.mxu2 %v2313_v41  ;;  %1765 = vmatpush.bf16.msra.mxu0 %v2533_v53  ;;  %v2911_v41 = vld [vmem:[%s3706_s16 + $0x254] sm:$0xf]  ;;  %v3008_v35 = vld [vmem:[%s3706_s16 + $0x55c] sm:$0xf] }
 0x110   : > { %v2373_v52 = vor.u32 %v2911_v41, %v2370_v42  ;;  %v2903_v53 = vld [vmem:[%s3706_s16 + $0x214] sm:$0xf]  ;;  %v3004_v41 = vld [vmem:[%s3706_s16 + $0x534] sm:$0xf0]  ;;  %v2872_v42 = vld [vmem:[%s3706_s16 + $0x11c] sm:$0xf] }
 0x111   : > { %1778 = vmatpush.bf16.msra.mxu1 %v2789_v54  ;;  %1807 = vmatpush.bf16.msra.mxu3 %v2441_v31  ;;  %v2338_v54 = vld [vmem:[%s3706_s16 + $0x230] sm:$0xf0]  ;;  %v2250_v31 = vld [vmem:[%s3706_s16 + $0x178] sm:$0xf0] }
 0x112   : > { %v2698_v62 = vld [vmem:[%s3706_s16 + $0x4f8] sm:$0xf0] }
 0x113   : > { %1791 = vmatpush.bf16.msra.mxu2 %v2281_v55  ;;  %1766 = vmatpush.bf16.msra.mxu0 %v2501_v1  ;;  %v2629_v55 = vor.u32 %v2975_v44, %v2626_v47  ;;  %v3028_v1 = vld [vmem:[%s3706_s16 + $0x5f4] sm:$0xf0]  ;;  %v2765_v44 = vor.u32 %v3008_v35, %v2762_v36  ;;  %v2936_v47 = vld [vmem:[%s3706_s16 + $0x31c] sm:$0xf] }
 0x114   : > { %v2825_v12 = vor.u32 %v3028_v1, %v2824_v0  ;;  %v2984_v9 = vld [vmem:[%s3706_s16 + $0x49c] sm:$0xf] }
 0x115   : > { %1779 = vmatpush.bf16.msra.mxu1 %v2757_v2  ;;  %1808 = vmatpush.bf16.msra.mxu3 %v2409_v46  ;;  %v2896_v2 = vld [vmem:[%s3706_s16 + $0x1dc] sm:$0xf] }
 0x116   : > { %v2218_v46 = vld [vmem:[%s3706_s16 + $0x138] sm:$0xf0] }
 0x117   : > { %1792 = vmatpush.bf16.msra.mxu2 %v2249_v3  ;;  %1767 = vmatpush.bf16.msra.mxu0 %v2469_v13  ;;  %v2341_v3 = vor.u32 %v2903_v53, %v2338_v54  ;;  %v2317_v13 = vor.u32 %v2896_v2, %v2314_v4  ;;  %v2477_v53 = vor.u32 %v2936_v47, %v2474_v48  ;;  %v2696_v54 = vld [vmem:[%s3706_s16 + $0x4d8] sm:$0xf]  ;;  %v2856_v4 = vld [vmem:[%s3706_s16 + $0x9c] sm:$0xf]  ;;  %v396_v47 = vld [vmem:[%s3715_s19] sm:$0xff] }
 0x118   : > { %v2664_v2 = vld [vmem:[%s3706_s16 + $0x498] sm:$0xf]  ;;  %v2666_v10 = vld [vmem:[%s3706_s16 + $0x4b8] sm:$0xf0] }
 0x119   : > { %1780 = vmatpush.bf16.msra.mxu1 %v2725_v14  ;;  %1809 = vmatpush.bf16.msra.mxu3 %v2377_v60  ;;  %v2573_v14 = vor.u32 %v2960_v5, %v2570_v6  ;;  %v2442_v60 = vld [vmem:[%s3706_s16 + $0x2f8] sm:$0xf0]  ;;  %v2701_v5 = vor.u32 %v2992_v61, %v2698_v62 }
 0x11a   : > { %v2445_v1 = vor.u32 %v2928_v59, %v2442_v60  ;;  %v2154_v6 = vld [vmem:[%s3706_s16 + $0xb8] sm:$0xf0] }
 0x11b   : > { %1793 = vmatpush.bf16.msra.mxu2 %v2217_v15  ;;  %1768 = vmatpush.bf16.msra.mxu0 %v2437_v25  ;;  %v2792_v15 = vld [vmem:[%s3706_s16 + $0x598] sm:$0xf]  ;;  %v2285_v25 = vor.u32 %v2888_v17, %v2282_v19  ;;  %v2848_v17 = vld [vmem:[%s3706_s16 + $0x5c] sm:$0xf] }
 0x11c   : > { %v2793_v24 = vor.u32 %v3020_v16, %v2792_v15  ;;  %v2632_v15 = vld [vmem:[%s3706_s16 + $0x458] sm:$0xf]  ;;  %v2122_v19 = vld [vmem:[%s3706_s16 + $0x78] sm:$0xf0] }
 0x11d   : > { %1781 = vmatpush.bf16.msra.mxu1 %v2693_v26  ;;  %1810 = vmatpush.bf16.msra.mxu3 %v2345_v11  ;;  %v2541_v26 = vor.u32 %v2952_v20, %v2538_v21  ;;  %v2980_v16 = vld [vmem:[%s3706_s16 + $0x474] sm:$0xf0]  ;;  %v2912_v20 = vld [vmem:[%s3706_s16 + $0x25c] sm:$0xf] }
 0x11e   : > { %v2378_v21 = vld [vmem:[%s3706_s16 + $0x278] sm:$0xf0] }
 0x11f   : > { %1794 = vmatpush.bf16.msra.mxu2 %v2185_v27  ;;  %1769 = vmatpush.bf16.msra.mxu0 %v2405_v38  ;;  %v2760_v27 = vld [vmem:[%s3706_s16 + $0x558] sm:$0xf]  ;;  %v2253_v38 = vor.u32 %v2880_v29, %v2250_v31  ;;  %v2976_v22 = vld [vmem:[%s3706_s16 + $0x45c] sm:$0xf] }
 0x120   : > { %1811 = vmatmul.bf16.vlgmr.msra.gmra.mxu3 %v3838_v43  ;;  %v2761_v37 = vor.u32 %v3012_v28, %v2760_v27  ;;  %v2634_v23 = vld [vmem:[%s3706_s16 + $0x478] sm:$0xf0]  ;;  %v2381_v27 = vor.u32 %v2912_v20, %v2378_v21  ;;  %v2600_v28 = vld [vmem:[%s3706_s16 + $0x418] sm:$0xf] }
 0x121   : > { %1782 = vmatpush.bf16.msra.mxu1 %v2661_v39  ;;  %1855 = vmatpush.bf16.msrb.mxu3 %v2829_v18  ;;  %v2509_v39 = vor.u32 %v2944_v32, %v2506_v33  ;;  %v2669_v18 = vor.u32 %v2984_v9, %v2666_v10  ;;  %v2972_v29 = vld [vmem:[%s3706_s16 + $0x434] sm:$0xf0]  ;;  %v2637_v31 = vor.u32 %v2976_v22, %v2634_v23  ;;  %v2090_v32 = vld [vmem:[%s3706_s16 + $0x38] sm:$0xf0] }
 0x122   : > { %v2904_v33 = vld [vmem:[%s3706_s16 + $0x21c] sm:$0xf] }
 0x123   : > { %1795 = vmatpush.bf16.msra.mxu2 %v2153_v40  ;;  %1770 = vmatpush.bf16.msra.mxu0 %v2373_v52  ;;  %v2728_v40 = vld [vmem:[%s3706_s16 + $0x518] sm:$0xf]  ;;  %v2221_v52 = vor.u32 %v2872_v42, %v2218_v46  ;;  %v2346_v35 = vld [vmem:[%s3706_s16 + $0x238] sm:$0xf0] }
 0x124   : > { %v2729_v51 = vor.u32 %v3004_v41, %v2728_v40  ;;  %v2601_v40 = vor.u32 %v2972_v29, %v2600_v28  ;;  %v399_v9 = vld [vmem:[%s3715_s19 + $0x18] sm:$0xff] }
 0x125   : > { %1783 = vmatpush.bf16.msra.mxu1 %v2629_v55  ;;  %1856 = vmatpush.bf16.msrb.mxu3 %v2797_v30  ;;  %v2996_v55 = vld [vmem:[%s3706_s16 + $0x4f4] sm:$0xf0]  ;;  %v2840_v30 = vld [vmem:[%s3706_s16 + $0x1c] sm:$0xf] }
 0x126   : > { %v2697_v63 = vor.u32 %v2996_v55, %v2696_v54  ;;  %v2093_v42 = vor.u32 %v2840_v30, %v2090_v32  ;;  %v401_v30 = vld [vmem:[%s3715_s19 + $0x28] sm:$0xff] }
 0x127   : > { %1796 = vmatpush.bf16.msra.mxu2 %v2121_v56  ;;  %1771 = vmatpush.bf16.msra.mxu0 %v2341_v3  ;;  %v2864_v56 = vld [vmem:[%s3706_s16 + $0xdc] sm:$0xf]  ;;  %v2988_v3 = vld [vmem:[%s3706_s16 + $0x4b4] sm:$0xf0] }
 0x128   : > { %v2189_v0 = vor.u32 %v2864_v56, %v2186_v58  ;;  %v2665_v11 = vor.u32 %v2988_v3, %v2664_v2 }
 0x129   : > { %1784 = vmatpush.bf16.msra.mxu1 %v2597_v7  ;;  %1857 = vmatpush.bf16.msrb.mxu3 %v2765_v44  ;;  %v2920_v7 = vld [vmem:[%s3706_s16 + $0x29c] sm:$0xf]  ;;  %v2349_v44 = vor.u32 %v2904_v33, %v2346_v35 }
 0x12a   : > { %1772 = vmatmul.bf16.vlgmr.msra.gmra.mxu0 %v3838_v43 }
 0x12b   : > { %1797 = vmatpush.bf16.msra.mxu2 %v2089_v8  ;;  %1816 = vmatpush.bf16.msrb.mxu0 %v2825_v12  ;;  %v2410_v8 = vld [vmem:[%s3706_s16 + $0x2b8] sm:$0xf0] }
 0x12c   : > { %1785 = vmatmul.bf16.vlgmr.msra.gmra.mxu1 %v3841_v45 }
 0x12d   : > { %1829 = vmatpush.bf16.msrb.mxu1 %v2317_v13  ;;  %1858 = vmatpush.bf16.msrb.mxu3 %v2733_v57  ;;  %v1565_v12 = vpop.f32.mrf.mxu0  ;;  %v2157_v13 = vor.u32 %v2856_v4, %v2154_v6  ;;  %v397_v57 = vld [vmem:[%s3715_s19 + $0x8] sm:$0xff] }
 0x12e   : > { %1798 = vmatmul.bf16.vlgmr.msra.gmra.mxu2 %v3830_v34 }
 0x12f   : > { %1842 = vmatpush.bf16.msrb.mxu2 %v2573_v14  ;;  %1817 = vmatpush.bf16.msrb.mxu0 %v2793_v24  ;;  %v2413_v14 = vor.u32 %v2920_v7, %v2410_v8  ;;  %v1578_v24 = vpop.f32.mrf.mxu1 }
 0x131   : > { %1830 = vmatpush.bf16.msrb.mxu1 %v2285_v25  ;;  %1859 = vmatpush.bf16.msrb.mxu3 %v2701_v5  ;;  %v2633_v25 = vor.u32 %v2980_v16, %v2632_v15  ;;  %v1591_v48 = vpop.f32.mrf.mxu2 }
 0x133   : > { %1843 = vmatpush.bf16.msrb.mxu2 %v2541_v26  ;;  %1818 = vmatpush.bf16.msrb.mxu0 %v2761_v37  ;;  %v2125_v26 = vor.u32 %v2848_v17, %v2122_v19  ;;  %v1604_v36 = vpop.f32.mrf.mxu3  ;;  %v2968_v37 = vld [vmem:[%s3706_s16 + $0x41c] sm:$0xf] }
 0x135   : > { %1831 = vmatpush.bf16.msrb.mxu1 %v2253_v38  ;;  %1860 = vmatpush.bf16.msrb.mxu3 %v2669_v18  ;;  %v2602_v38 = vld [vmem:[%s3706_s16 + $0x438] sm:$0xf0]  ;;  %v1567_v41 = vpop.f32.mrf.mxu0  ;;  %v400_v18 = vld [vmem:[%s3715_s19 + $0x20] sm:$0xff] }
 0x136   : > { %v2605_v46 = vor.u32 %v2968_v37, %v2602_v38  ;;  %v402_v41 = vld [vmem:[%s3715_s19 + $0x30] sm:$0xff] }
 0x137   : > { %1844 = vmatpush.bf16.msrb.mxu2 %v2509_v39  ;;  %1819 = vmatpush.bf16.msrb.mxu0 %v2729_v51  ;;  %v1579_v39 = vadd.f32 %v1578_v24, %v1565_v12  ;;  %v1580_v50 = vpop.f32.mrf.mxu1 }
 0x139   : > { %1832 = vmatpush.bf16.msrb.mxu1 %v2221_v52  ;;  %1861 = vmatpush.bf16.msrb.mxu3 %v2637_v31  ;;  %v1592_v49 = vadd.f32 %v1591_v48, %v1579_v39 }
 0x13b   : > { %1845 = vmatpush.bf16.msrb.mxu2 %v2477_v53  ;;  %1820 = vmatpush.bf16.msrb.mxu0 %v2697_v63  ;;  %v1868_v51 = vadd.f32 %v1592_v49, %v396_v47  ;;  %v1606_v52 = vpop.f32.mrf.mxu3  ;;  %v1593_v53 = vpop.f32.mrf.mxu2 }
 0x13c   : > { %v403_v52 = vld [vmem:[%s3715_s19 + $0x38] sm:$0xff] }
 0x13d   : > { %1833 = vmatpush.bf16.msrb.mxu1 %v2189_v0  ;;  %1862 = vmatpush.bf16.msrb.mxu3 %v2605_v46  ;;  %1876 = vst [vmem:[%s3715_s19] sm:$0xff] %v1868_v51 }
 0x13f   : > { %1846 = vmatpush.bf16.msrb.mxu2 %v2445_v1  ;;  %1821 = vmatpush.bf16.msrb.mxu0 %v2665_v11 }
 0x140   : > { %1863 = vmatmul.bf16.vlgmr.msrb.gmra.mxu3 %v3841_v45 }
 0x141   : > { %1834 = vmatpush.bf16.msrb.mxu1 %v2157_v13 }
 0x143   : > { %1847 = vmatpush.bf16.msrb.mxu2 %v2413_v14  ;;  %1822 = vmatpush.bf16.msrb.mxu0 %v2633_v25  ;;  %v1656_v61 = vpop.f32.mrf.mxu3 }
 0x145   : > { %1835 = vmatpush.bf16.msrb.mxu1 %v2125_v26 }
 0x147   : > { %1848 = vmatpush.bf16.msrb.mxu2 %v2381_v27  ;;  %1823 = vmatpush.bf16.msrb.mxu0 %v2601_v40  ;;  %v1617_v54 = vpop.f32.mrf.mxu0 }
 0x148   : > { %v1618_v55 = vadd.f32 %v1617_v54, %v1604_v36 }
 0x149   : > { %1836 = vmatpush.bf16.msrb.mxu1 %v2093_v42  ;;  %v1630_v56 = vpop.f32.mrf.mxu1 }
 0x14a   : > { %1824 = vmatmul.bf16.vlgmr.msrb.gmra.mxu0 %v3841_v45  ;;  %v1631_v58 = vadd.f32 %v1630_v56, %v1618_v55  ;;  %v398_v45 = vld [vmem:[%s3715_s19 + $0x10] sm:$0xff] }
 0x14b   : > { %1849 = vmatpush.bf16.msrb.mxu2 %v2349_v44  ;;  %v1658_v0 = vpop.f32.mrf.mxu3 }
 0x14c   : > { %1837 = vmatmul.bf16.vlgmr.msrb.gmra.mxu1 %v3830_v34  ;;  %v1869_v59 = vadd.f32 %v1631_v58, %v397_v57 }
 0x14e   : > { %1850 = vmatmul.bf16.vlgmr.msrb.gmra.mxu2 %v3838_v43  ;;  %1877 = vst [vmem:[%s3715_s19 + $0x8] sm:$0xff] %v1869_v59 }
 0x14f   : > { %v1619_v62 = vpop.f32.mrf.mxu0 }
 0x151   : > { %v1643_v60 = vpop.f32.mrf.mxu2  ;;  %v1632_v63 = vpop.f32.mrf.mxu1 }
 0x152   : > { %v1657_v43 = vadd.f32 %v1656_v61, %v1643_v60 }
 0x159   : > { %v1645_v34 = vpop.f32.mrf.mxu2 }
 0x163   : > { %v1708_v6 = vpop.f32.mrf.mxu3 }
 0x167   : > { %v1669_v1 = vpop.f32.mrf.mxu0 }
 0x168   : > { %v1670_v2 = vadd.f32 %v1669_v1, %v1657_v43 }
 0x169   : > { %v1682_v3 = vpop.f32.mrf.mxu1 }
 0x16a   : > { %v1870_v4 = vadd.f32 %v1670_v2, %v398_v45 }
 0x16b   : > { %v1710_v14 = vpop.f32.mrf.mxu3 }
 0x16c   : > { %1878 = vst [vmem:[%s3715_s19 + $0x10] sm:$0xff] %v1870_v4 }
 0x16f   : > { %v1671_v8 = vpop.f32.mrf.mxu0 }
 0x171   : > { %v1695_v5 = vpop.f32.mrf.mxu2  ;;  %v1684_v11 = vpop.f32.mrf.mxu1 }
 0x172   : > { %v1696_v7 = vadd.f32 %v1695_v5, %v1682_v3 }
 0x174   : > { %v1709_v10 = vadd.f32 %v1708_v6, %v1696_v7 }
 0x176   : > { %v1871_v12 = vadd.f32 %v1709_v10, %v399_v9 }
 0x178   : > { %1879 = vst [vmem:[%s3715_s19 + $0x18] sm:$0xff] %v1871_v12 }
 0x179   : > { %v1697_v13 = vpop.f32.mrf.mxu2 }
 0x183   : > { %v1760_v22 = vpop.f32.mrf.mxu3 }
 0x187   : > { %v1721_v15 = vpop.f32.mrf.mxu0 }
 0x189   : > { %v1734_v16 = vpop.f32.mrf.mxu1 }
 0x18a   : > { %v1735_v17 = vadd.f32 %v1734_v16, %v1721_v15 }
 0x18b   : > { %v1762_v26 = vpop.f32.mrf.mxu3 }
 0x18f   : > { %v1723_v20 = vpop.f32.mrf.mxu0 }
 0x191   : > { %v1747_v19 = vpop.f32.mrf.mxu2  ;;  %v1736_v23 = vpop.f32.mrf.mxu1 }
 0x192   : > { %v1748_v21 = vadd.f32 %v1747_v19, %v1735_v17 }
 0x194   : > { %v1872_v24 = vadd.f32 %v1748_v21, %v400_v18 }
 0x196   : > { %1880 = vst [vmem:[%s3715_s19 + $0x20] sm:$0xff] %v1872_v24 }
 0x199   : > { %v1749_v25 = vpop.f32.mrf.mxu2 }
 0x1a3   : > { %v1812_v35 = vpop.f32.mrf.mxu3 }
 0x1a7   : > { %v1773_v27 = vpop.f32.mrf.mxu0 }
 0x1a8   : > { %v1774_v28 = vadd.f32 %v1773_v27, %v1760_v22 }
 0x1a9   : > { %v1786_v29 = vpop.f32.mrf.mxu1 }
 0x1aa   : > { %v1787_v31 = vadd.f32 %v1786_v29, %v1774_v28 }
 0x1ab   : > { %v1814_v39 = vpop.f32.mrf.mxu3 }
 0x1ac   : > { %v1873_v32 = vadd.f32 %v1787_v31, %v401_v30 }
 0x1ae   : > { %1881 = vst [vmem:[%s3715_s19 + $0x28] sm:$0xff] %v1873_v32 }
 0x1af   : > { %v1775_v36 = vpop.f32.mrf.mxu0 }
 0x1b1   : > { %v1799_v33 = vpop.f32.mrf.mxu2  ;;  %v1788_v37 = vpop.f32.mrf.mxu1 }
 0x1b2   : > { %v1813_v40 = vadd.f32 %v1812_v35, %v1799_v33 }
 0x1b9   : > { %v1801_v38 = vpop.f32.mrf.mxu2 }
 0x1c3   : > { %v1864_v50 = vpop.f32.mrf.mxu3 }
 0x1c7   : > { %v1825_v42 = vpop.f32.mrf.mxu0 }
 0x1c8   : > { %v1826_v44 = vadd.f32 %v1825_v42, %v1813_v40 }
 0x1c9   : > { %v1838_v46 = vpop.f32.mrf.mxu1 }
 0x1ca   : > { %v1874_v47 = vadd.f32 %v1826_v44, %v402_v41 }
 0x1cc   : > { %1882 = vst [vmem:[%s3715_s19 + $0x30] sm:$0xff] %v1874_v47 }
 0x1cf   : > { %v1827_v51 = vpop.f32.mrf.mxu0 }
 0x1d1   : > { %v1851_v48 = vpop.f32.mrf.mxu2  ;;  %v1840_v53 = vpop.f32.mrf.mxu1 }
 0x1d2   : > { %v1852_v49 = vadd.f32 %v1851_v48, %v1838_v46 }
 0x1d4   : > { %v1865_v54 = vadd.f32 %v1864_v50, %v1852_v49 }
 0x1d6   : > { %v1875_v55 = vadd.f32 %v1865_v54, %v403_v52 }
 0x1d8   : > { %1883 = vst [vmem:[%s3715_s19 + $0x38] sm:$0xff] %v1875_v55 }
 0x1d9   : > { %v1853_v56 = vpop.f32.mrf.mxu2 }
 0x1da   : > { %3329 = shalt.err (!%p3326_p10)
}
 0x1db   : > { %3045 = dma.vmem_to_hbm [thread:$0]  (%p3609_p7), %s1899_s10, 1024, %s1901_s30, %s1885_s8   ;;  %v1866_v57 = vpop.f32.mrf.mxu3 }
 0x1dc PF: > { %s4290_s18 = sld [smem:[#allocation21_spill]] }
 0x1dd   : > { %s4291_s19 = sld [smem:[#allocation15_spill]] }
 0x1e2   : > { %p3065_p12 = scmp.ge.s32.totalorder %s4290_s18, 2 }
 0x1e3   : > { %s1912_s5 = sand.u32 1, %s4291_s19  }
 0x1e4   : > { %p3061_p13 = pnand %p3065_p12, %p3614_p2  ;;  %s1913_s23 = scalar_lea.sflag [#allocation4], %s1912_s5 }
 0x1e6   : > { %p3062_p1 = pneg %p3061_p13 }
 0x1e8   : > { %3399 = dma.done.wait (%p3062_p1), %s1913_s23, 1024  }
 0x1e9   : > { %3401 = vsyncadd (%p3062_p1), %s1913_s23, 4294966272  ;;  %s26_s28 = sadd.s32 1, %s4290_s18   ;;  %s4294_s15 = sld [smem:[#allocation16_spill]] }
 0x1ea   : > { %p4183_p0 = scmp.ge.s32.totalorder %s26_s28, 6   ;;  %s4295_s18 = sld [smem:[#allocation17_spill]] }
 0x1eb   : > { %s4296_s7 = sld [smem:[#allocation18_spill]]  ;;  %s4300_s16 = smov %s3412_s17 }
 0x1ec   : > { %s4297_s23 = sld [smem:[#allocation24_spill]]  ;;  %s4301_s17 = smov %s3678_s4 }
 0x1ed   : > { %s4298_s13 = sld [smem:[#allocation23_spill]]  ;;  %s4302_s19 = smov %s3424_s20 }
 0x1ee   : > { %s4303_s20 = smov %s3683_s1  ;;  %s4304_s21 = smov %s3432_s22 }
 0x1ef   : > { %s4306_s24 = smov %s3448_s26  ;;  %s4307_s25 = smov %s3452_s27 }
 0x1f0   : > { %s4309_s27 = smov %s4315_s14  ;;  %25 = sbr.rel (!%p4183_p0) target bundleno = 17 (0x11), region = 122 }
 0x1f1   : > { %s4305_s22 = smov %s4296_s7 }
 0x1f3   : > { %s4308_s26 = smov %s4298_s13 }
 0x1f5   :  { %1919 = vsyncpa [#allocation3], 1 }
 0x1f6   :  { %1921 = vsyncpa [#allocation3 + $0x1], 1 }
 0x1f7   :  { %1922 = vsyncpa [#allocation6], 1 }
 0x1f8   :  { %1924 = vsyncpa [#allocation6 + $0x1], 1 }
 0x1f9   :  { %1925 = vsyncpa [#allocation9], 1 }
 0x1fa   :  { %1927 = vsyncpa [#allocation9 + $0x1], 1 }
 0x1fb   :  { %1928 = vsyncpa [#allocation4], 1 }
 0x1fc   :  { %1930 = vsyncpa [#allocation4 + $0x1], 1 }

</bundles_post_ra>
